<compile_context>
chip_gen: v6e
topology: v6e:2x2x1
jax: 0.10.0
libtpu: 0.0.40
codegen_flags: <defaults>
</compile_context>

<pallas_src>
import functools
import math

import jax
import jax.numpy as jnp
from jax import lax
from jax.experimental import pallas as pl
from jax.experimental.pallas import tpu as pltpu

BN_EPS = 1e-5
LANE = 128
VMEM_LIMIT = 32 * 1024 * 1024
TILE_BUDGET = 6 * 1024 * 1024     # per-tile VMEM working-set budget (f32)


def _round_up(a, b):
    return ((a + b - 1) // b) * b


def _row_tile(h_out, w_out, cp):
    """Largest divisor of h_out whose row slab fits the VMEM working-set budget.

    No small-tile cap: for small/medium images this returns h_out, i.e. the whole
    image per grid step (grid over batch only), maximizing the matmul M dimension
    and minimizing per-grid-step overhead.
    """
    per_row = w_out * cp * 4
    cap = max(1, TILE_BUDGET // (8 * per_row))
    tr = min(h_out, cap)
    while h_out % tr:
        tr -= 1
    return tr


# ----------------------------- Pallas kernels ------------------------------ #

def _make_conv1_kernel(TR, W_out, Kp, CP, H1p):
    """conv1 as ONE lane-dense K=Kp matmul per tile + per-tile BN1 partial stats.

    Writes straight into the row-padded (1, H_out+2, W_out, CP) per-batch resident
    output block (aligned full-tile stores only); the two halo rows are zeroed once
    per batch, so no wrapper-side jnp.pad / extra HBM pass is needed for conv2.
    """

    def kernel(x_ref, w_ref, b_ref, y1p_ref, st_ref):
        r = pl.program_id(1)

        @pl.when(r == 0)
        def _():
            y1p_ref[0, 0, :, :] = jnp.zeros((W_out, CP), jnp.float32)
            y1p_ref[0, H1p - 1, :, :] = jnp.zeros((W_out, CP), jnp.float32)

        xt = x_ref[...].reshape(TR * W_out, Kp)
        y = jnp.dot(xt, w_ref[...], preferred_element_type=jnp.float32) + b_ref[...]
        y1p_ref[0, pl.ds(r * TR + 1, TR), :, :] = y.reshape(TR, W_out, CP)
        # training-mode BN partial sums (two-phase reduction), single (2, CP) store
        st_ref[0, 0, :, :] = jnp.concatenate(
            [jnp.sum(y, axis=0, keepdims=True),
             jnp.sum(y * y, axis=0, keepdims=True)], axis=0)

    return kernel


def _make_conv2_kernel(TR, W_out, CP, H1p):
    """BN1-affine + ReLU + conv2 (3x3 'same') + per-tile BN2 partial stats.

    Reads the row-padded pre-BN conv1 output; the column halo is built in-registers
    (one sublane concat per shift), and the 9 tap matmuls accumulate in registers.
    """

    def kernel(y1p_ref, s1_ref, t1_ref, w_ref, b_ref, y2_ref, st_ref):
        r = pl.program_id(1)
        row0 = pl.multiple_of(r * TR, TR)

        region = y1p_ref[0, pl.ds(row0, TR + 2), :, :]            # (TR+2, W_out, CP)
        a = jnp.maximum(region * s1_ref[...] + t1_ref[...], 0.0)  # BN1 + ReLU
        # the halo rows hold zeros pre-affine; re-zero them post affine/ReLU
        rid = row0 + lax.broadcasted_iota(jnp.int32, (TR + 2, W_out, 1), 0)
        a = jnp.where((rid > 0) & (rid < H1p - 1), a, 0.0)

        # column-shifted views (conv2 zero padding along W), built once per tile
        zc = jnp.zeros((TR + 2, 1, CP), jnp.float32)
        shifted = (
            jnp.concatenate([zc, a[:, :W_out - 1, :]], axis=1),   # kw=0 : a[:, w-1]
            a,                                                    # kw=1 : a[:, w]
            jnp.concatenate([a[:, 1:, :], zc], axis=1),           # kw=2 : a[:, w+1]
        )

        acc = None
        for kh in range(3):
            for kw in range(3):
                tap = shifted[kw][kh:kh + TR, :, :].reshape(TR * W_out, CP)
                d = jnp.dot(tap, w_ref[kh * 3 + kw],
                            preferred_element_type=jnp.float32)
                acc = d if acc is None else acc + d
        y2 = acc + b_ref[...]
        y2_ref[...] = y2.reshape(1, TR, W_out, CP)
        st_ref[0, 0, :, :] = jnp.concatenate(
            [jnp.sum(y2, axis=0, keepdims=True),
             jnp.sum(y2 * y2, axis=0, keepdims=True)], axis=0)

    return kernel


def _finalize_kernel(y2_ref, skip_ref, s2_ref, t2_ref, out_ref):
    """BN2-affine + residual add + ReLU (lane-dense, whole row-tile per step)."""
    y = y2_ref[...] * s2_ref[...] + t2_ref[...]
    out_ref[...] = jnp.maximum(y + skip_ref[...], 0.0)


# ------------------------------ pallas_call glue ---------------------------- #

def _compiler_params():
    return pltpu.CompilerParams(
        dimension_semantics=("parallel", "arbitrary"),
        vmem_limit_bytes=VMEM_LIMIT)


def _conv1_stats(xcol, w1, b1, TR, CP):
    N, H_out, W_out, Kp = xcol.shape
    H1p = H_out + 2
    n_tiles = H_out // TR

    kernel = _make_conv1_kernel(TR, W_out, Kp, CP, H1p)
    flops = 2 * N * H_out * W_out * Kp * CP
    bytes_acc = xcol.size * 4 + w1.size * 4 + N * H1p * W_out * CP * 4

    return pl.pallas_call(
        kernel,
        out_shape=(jax.ShapeDtypeStruct((N, H1p, W_out, CP), jnp.float32),
                   jax.ShapeDtypeStruct((N, n_tiles, 2, CP), jnp.float32)),
        grid=(N, n_tiles),
        in_specs=[pl.BlockSpec((1, TR, W_out, Kp), lambda n, r: (n, r, 0, 0)),
                  pl.BlockSpec((Kp, CP), lambda n, r: (0, 0)),
                  pl.BlockSpec((1, CP), lambda n, r: (0, 0))],
        out_specs=(pl.BlockSpec((1, H1p, W_out, CP), lambda n, r: (n, 0, 0, 0)),
                   pl.BlockSpec((1, 1, 2, CP), lambda n, r: (n, r, 0, 0))),
        compiler_params=_compiler_params(),
        cost_estimate=pl.CostEstimate(flops=flops, transcendentals=0,
                                      bytes_accessed=bytes_acc),
    )(xcol, w1, b1)


def _bnrelu_conv2_stats(y1p, scale1, shift1, w2, b2, TR, CP):
    N, H1p, W_out, _ = y1p.shape
    H_out = H1p - 2
    n_tiles = H_out // TR

    kernel = _make_conv2_kernel(TR, W_out, CP, H1p)
    flops = 2 * N * H_out * W_out * 9 * CP * CP
    bytes_acc = y1p.size * 4 + w2.size * 4 + N * H_out * W_out * CP * 4

    return pl.pallas_call(
        kernel,
        out_shape=(jax.ShapeDtypeStruct((N, H_out, W_out, CP), jnp.float32),
                   jax.ShapeDtypeStruct((N, n_tiles, 2, CP), jnp.float32)),
        grid=(N, n_tiles),
        in_specs=[pl.BlockSpec((1, H1p, W_out, CP), lambda n, r: (n, 0, 0, 0)),
                  pl.BlockSpec((1, CP), lambda n, r: (0, 0)),
                  pl.BlockSpec((1, CP), lambda n, r: (0, 0)),
                  pl.BlockSpec((9, CP, CP), lambda n, r: (0, 0, 0)),
                  pl.BlockSpec((1, CP), lambda n, r: (0, 0))],
        out_specs=(pl.BlockSpec((1, TR, W_out, CP), lambda n, r: (n, r, 0, 0)),
                   pl.BlockSpec((1, 1, 2, CP), lambda n, r: (n, r, 0, 0))),
        compiler_params=_compiler_params(),
        cost_estimate=pl.CostEstimate(flops=flops, transcendentals=0,
                                      bytes_accessed=bytes_acc),
    )(y1p, scale1, shift1, w2, b2)


def _bn_add_relu(y2, skip, scale2, shift2, TR):
    N, H_out, W_out, CP = y2.shape
    n_tiles = H_out // TR
    tile_spec = pl.BlockSpec((1, TR, W_out, CP), lambda n, r: (n, r, 0, 0))
    vec_spec = pl.BlockSpec((1, CP), lambda n, r: (0, 0))
    return pl.pallas_call(
        _finalize_kernel,
        out_shape=jax.ShapeDtypeStruct((N, H_out, W_out, CP), jnp.float32),
        grid=(N, n_tiles),
        in_specs=[tile_spec, tile_spec, vec_spec, vec_spec],
        out_specs=tile_spec,
        compiler_params=_compiler_params(),
    )(y2, skip, scale2, shift2)


def _bn_affine(stats, gamma, beta, cnt):
    """Finalize training-mode BN: global batch stats from per-tile partial sums.

    Kept in f32 to limit cancellation in the single-pass E[x^2]-mean^2 variance.
    # TODO(synk): mean-shifted (two-pass) accumulation for extreme activation means.
    """
    tot = jnp.sum(stats, axis=(0, 1))                    # (2, CP)
    mean = tot[0] / cnt
    var = jnp.maximum(tot[1] / cnt - mean * mean, 0.0)   # biased variance
    inv = lax.rsqrt(var + BN_EPS)
    scale = gamma * inv
    shift = beta - mean * scale
    return scale.reshape(1, -1), shift.reshape(1, -1)


# ------------------------------ ResidualBlock ------------------------------- #

@functools.partial(jax.jit, static_argnums=(2,))
def residual_block_forward(x_nchw, params, stride):
    """Matches ResidualBlock.forward (fresh module => BN uses batch statistics)."""
    N, in_c, H, W = x_nchw.shape
    out_c = params["w1"].shape[0]
    CP = _round_up(out_c, LANE)                # lane-dense channel padding
    pc = CP - out_c
    # TODO(synk): for genuinely-small out_c regimes a channels-on-sublanes layout
    # would avoid the dead 128-lane padding; kept lane-dense CP=128 here.

    x = jnp.transpose(x_nchw, (0, 2, 3, 1)).astype(jnp.float32)   # NCHW -> NHWC
    S = stride
    H_out = (H - 1) // S + 1
    W_out = (W - 1) // S + 1
    TR = _row_tile(H_out, W_out, CP)

    # ---- conv1 im2col (wrapper-side; cheap XLA for small in_c) ----
    K9 = 9 * in_c
    Kp = _round_up(K9, LANE)
    xp = jnp.pad(x, ((0, 0), (1, 1), (1, 1), (0, 0)))
    cols = [xp[:, kh:kh + S * (H_out - 1) + 1:S, kw:kw + S * (W_out - 1) + 1:S, :]
            for kh in range(3) for kw in range(3)]
    xcol = jnp.concatenate(cols, axis=-1)                          # (N,Ho,Wo,9*Cin)
    xcol = jnp.pad(xcol, ((0, 0), (0, 0), (0, 0), (0, Kp - K9)))
    # TODO(synk): for large in_c (9*in_c >> 128) use a per-tap path to avoid the
    # 9x input replication.

    # weights / per-channel params padded once (zero pads stay zero end-to-end)
    w1 = jnp.transpose(params["w1"], (2, 3, 1, 0)).reshape(K9, out_c)
    w1 = jnp.pad(w1, ((0, Kp - K9), (0, pc)))                      # (Kp, CP)
    b1 = jnp.pad(params["b1"], (0, pc)).reshape(1, CP)
    w2 = jnp.pad(jnp.transpose(params["w2"], (2, 3, 1, 0)),
                 ((0, 0), (0, 0), (0, pc), (0, pc))).reshape(9, CP, CP)
    b2 = jnp.pad(params["b2"], (0, pc)).reshape(1, CP)
    g1 = jnp.pad(params["g1"], (0, pc))
    be1 = jnp.pad(params["be1"], (0, pc))
    g2 = jnp.pad(params["g2"], (0, pc))
    be2 = jnp.pad(params["be2"], (0, pc))

    # skip path: pure indexing / zero padding (zero-compute glue)
    skip = x[:, ::S, ::S, :]
    skip = jnp.pad(skip, ((0, 0), (0, 0), (0, 0), (0, CP - in_c)))

    cnt = N * H_out * W_out

    # conv1 (single K=Kp matmul per tile) -> row-padded intermediate + BN1 stats
    y1p, st1 = _conv1_stats(xcol, w1, b1, TR, CP)
    scale1, shift1 = _bn_affine(st1, g1, be1, cnt)

    # BN1+ReLU fused with conv2 + BN2 partial stats (column halo built in-kernel)
    y2, st2 = _bnrelu_conv2_stats(y1p, scale1, shift1, w2, b2, TR, CP)
    scale2, shift2 = _bn_affine(st2, g2, be2, cnt)

    # BN2 + residual add + ReLU
    out = _bn_add_relu(y2, skip, scale2, shift2, TR)

    out = out[..., :out_c]
    return jnp.transpose(out, (0, 3, 1, 2))                        # NHWC -> NCHW


# ------------------------------ pure-JAX reference --------------------------- #

def reference_forward(x, params, stride):
    def conv(x, w, b, s):
        y = lax.conv_general_dilated(
            x, w, (s, s), ((1, 1), (1, 1)),
            dimension_numbers=("NCHW", "OIHW", "NCHW"))
        return y + b[None, :, None, None]

    def bn(x, g, be):
        mean = jnp.mean(x, axis=(0, 2, 3), keepdims=True)
        var = jnp.mean((x - mean) ** 2, axis=(0, 2, 3), keepdims=True)
        return ((x - mean) * lax.rsqrt(var + BN_EPS)
                * g[None, :, None, None] + be[None, :, None, None])

    in_c = x.shape[1]
    out_c = params["w1"].shape[0]
    if stride > 1 or in_c != out_c:
        skip = x[:, :, ::stride, ::stride]
        skip = jnp.pad(skip, ((0, 0), (0, out_c - in_c), (0, 0), (0, 0)))
    else:
        skip = x

    y = jax.nn.relu(bn(conv(x, params["w1"], params["b1"], stride),
                       params["g1"], params["be1"]))
    y = bn(conv(y, params["w2"], params["b2"], 1), params["g2"], params["be2"])
    return jax.nn.relu(y + skip)


# ----------------------------------- main ------------------------------------ #

if __name__ == "__main__":
    def run_case(key, n, in_c, out_c, h, w, stride):
        ks = jax.random.split(key, 5)
        x = jax.random.normal(ks[0], (n, in_c, h, w), jnp.float32)
        fan1, fan2 = in_c * 9, out_c * 9
        params = dict(
            w1=jax.random.normal(ks[1], (out_c, in_c, 3, 3), jnp.float32) / math.sqrt(fan1),
            b1=jax.random.normal(ks[2], (out_c,), jnp.float32) * 0.05,
            w2=jax.random.normal(ks[3], (out_c, out_c, 3, 3), jnp.float32) / math.sqrt(fan2),
            b2=jax.random.normal(ks[4], (out_c,), jnp.float32) * 0.05,
            g1=jnp.ones((out_c,), jnp.float32), be1=jnp.zeros((out_c,), jnp.float32),
            g2=jnp.ones((out_c,), jnp.float32), be2=jnp.zeros((out_c,), jnp.float32),
        )
        out = jax.block_until_ready(residual_block_forward(x, params, stride))
        ref = reference_forward(x, params, stride)
        h_out = (h - 1) // stride + 1
        w_out = (w - 1) // stride + 1
        assert out.shape == ref.shape == (n, out_c, h_out, w_out), out.shape
        err = float(jnp.max(jnp.abs(out - ref)))
        assert err < 1e-3, f"max abs error {err}"

    key = jax.random.PRNGKey(0)
    k1, k2 = jax.random.split(key)
    run_case(k1, 2, 4, 8, 16, 16, 2)   # projection skip (stride 2, 4 -> 8 channels)
    run_case(k2, 2, 8, 8, 8, 8, 1)     # identity skip (stride 1, 8 -> 8 channels)
    print("KERNEL_OK")
</pallas_src>

<mosaic_0001>
module attributes {stable_mosaic.version = 11 : i64} {
  func.func @kernel(%arg0: i32, %arg1: i32, %arg2: memref<1x8x8x128xf32, #tpu.memory_space<vmem>>, %arg3: memref<128x128xf32, #tpu.memory_space<vmem>>, %arg4: memref<1x128xf32, #tpu.memory_space<vmem>>, %arg5: memref<1x10x8x128xf32, #tpu.memory_space<vmem>>, %arg6: memref<1x1x2x128xf32, #tpu.memory_space<vmem>>) attributes {dimension_semantics = [#tpu.dimension_semantics<parallel>, #tpu.dimension_semantics<arbitrary>], iteration_bounds = array<i64: 2, 1>, scalar_prefetch = 0 : i64, scratch_operands = 0 : i64, tpu.core_type = #tpu.core_type<tc>, window_params = [{transform_indices = @transform_0, window_bounds = array<i64: 1, 8, 8, 128>}, {pipeline_mode = #tpu.pipeline_mode<synchronous>, transform_indices = @transform_1, window_bounds = array<i64: 128, 128>}, {pipeline_mode = #tpu.pipeline_mode<synchronous>, transform_indices = @transform_2, window_bounds = array<i64: 1, 128>}, {transform_indices = @transform_3, window_bounds = array<i64: 1, 10, 8, 128>}, {transform_indices = @transform_4, window_bounds = array<i64: 1, 1, 2, 128>}]} {
    %c0_i32 = arith.constant 0 : i32
    %0 = arith.cmpi eq, %arg1, %c0_i32 : i32
    %1 = arith.extui %0 : i1 to i32
    %c0_i32_0 = arith.constant 0 : i32
    %2 = arith.cmpi ne, %1, %c0_i32_0 : i32
    scf.if %2 {
      %cst_17 = arith.constant 0.000000e+00 : f32
      %26 = vector.broadcast %cst_17 : f32 to vector<8x128xf32>
      %c0_18 = arith.constant 0 : index
      %c0_19 = arith.constant 0 : index
      %c0_20 = arith.constant 0 : index
      %c0_21 = arith.constant 0 : index
      %27 = vector.load %arg5[%c0_18, %c0_19, %c0_20, %c0_21] : memref<1x10x8x128xf32, #tpu.memory_space<vmem>>, vector<1x1x8x128xf32>
      %28 = vector.shape_cast %27 : vector<1x1x8x128xf32> to vector<8x128xf32>
      %29 = vector.shape_cast %26 : vector<8x128xf32> to vector<1x1x8x128xf32>
      tpu.vector_store %arg5[%c0_18, %c0_19, %c0_20, %c0_21], %29 {strides = array<i32>} : memref<1x10x8x128xf32, #tpu.memory_space<vmem>>, vector<1x1x8x128xf32>,
      %cst_22 = arith.constant 0.000000e+00 : f32
      %30 = vector.broadcast %cst_22 : f32 to vector<8x128xf32>
      %c0_23 = arith.constant 0 : index
      %c9 = arith.constant 9 : index
      %c0_24 = arith.constant 0 : index
      %c0_25 = arith.constant 0 : index
      %31 = vector.load %arg5[%c0_23, %c9, %c0_24, %c0_25] : memref<1x10x8x128xf32, #tpu.memory_space<vmem>>, vector<1x1x8x128xf32>
      %32 = vector.shape_cast %31 : vector<1x1x8x128xf32> to vector<8x128xf32>
      %33 = vector.shape_cast %30 : vector<8x128xf32> to vector<1x1x8x128xf32>
      tpu.vector_store %arg5[%c0_23, %c9, %c0_24, %c0_25], %33 {strides = array<i32>} : memref<1x10x8x128xf32, #tpu.memory_space<vmem>>, vector<1x1x8x128xf32>,
    } else {
    }
    %c0 = arith.constant 0 : index
    %c0_1 = arith.constant 0 : index
    %c0_2 = arith.constant 0 : index
    %c0_3 = arith.constant 0 : index
    %3 = vector.load %arg2[%c0, %c0_1, %c0_2, %c0_3] : memref<1x8x8x128xf32, #tpu.memory_space<vmem>>, vector<1x8x8x128xf32>
    %4 = vector.shape_cast %3 : vector<1x8x8x128xf32> to vector<64x128xf32>
    %c0_4 = arith.constant 0 : index
    %c0_5 = arith.constant 0 : index
    %5 = vector.load %arg3[%c0_4, %c0_5] : memref<128x128xf32, #tpu.memory_space<vmem>>, vector<128x128xf32>
    %cst = arith.constant dense<0.000000e+00> : vector<64x128xf32>
    %6 = tpu.matmul %4, %5, %cst {dimension_numbers = #tpu.dot_dimension_numbers<[1], [0], [0], [1], [0, 0, 1, 1], [], []>} : vector<64x128xf32>, vector<128x128xf32>, vector<64x128xf32> -> vector<64x128xf32>
    %c0_6 = arith.constant 0 : index
    %c0_7 = arith.constant 0 : index
    %7 = vector.load %arg4[%c0_6, %c0_7] : memref<1x128xf32, #tpu.memory_space<vmem>>, vector<1x128xf32>
    %8 = vector.broadcast %7 : vector<1x128xf32> to vector<64x128xf32>
    %9 = arith.addf %6, %8 : vector<64x128xf32>
    %10 = vector.shape_cast %9 : vector<64x128xf32> to vector<8x8x128xf32>
    %c8_i32 = arith.constant 8 : i32
    %11 = arith.muli %arg1, %c8_i32 : i32
    %c1_i32 = arith.constant 1 : i32
    %12 = arith.addi %11, %c1_i32 : i32
    %c0_8 = arith.constant 0 : index
    %13 = arith.index_cast %12 : i32 to index
    %c0_9 = arith.constant 0 : index
    %c0_10 = arith.constant 0 : index
    %14 = vector.load %arg5[%c0_8, %13, %c0_9, %c0_10] : memref<1x10x8x128xf32, #tpu.memory_space<vmem>>, vector<1x8x8x128xf32>
    %15 = vector.shape_cast %14 : vector<1x8x8x128xf32> to vector<8x8x128xf32>
    %16 = vector.shape_cast %10 : vector<8x8x128xf32> to vector<1x8x8x128xf32>
    tpu.vector_store %arg5[%c0_8, %13, %c0_9, %c0_10], %16 {strides = array<i32>} : memref<1x10x8x128xf32, #tpu.memory_space<vmem>>, vector<1x8x8x128xf32>,
    %cst_11 = arith.constant dense<0.000000e+00> : vector<128xf32>
    %17 = vector.multi_reduction <add>, %9, %cst_11 [0] : vector<64x128xf32> to vector<128xf32>
    %18 = vector.shape_cast %17 : vector<128xf32> to vector<1x128xf32>
    %19 = arith.mulf %9, %9 : vector<64x128xf32>
    %cst_12 = arith.constant dense<0.000000e+00> : vector<128xf32>
    %20 = vector.multi_reduction <add>, %19, %cst_12 [0] : vector<64x128xf32> to vector<128xf32>
    %21 = vector.shape_cast %20 : vector<128xf32> to vector<1x128xf32>
    %22 = tpu.concatenate %18, %21 in 0 : vector<1x128xf32>, vector<1x128xf32> -> vector<2x128xf32>
    %c0_13 = arith.constant 0 : index
    %c0_14 = arith.constant 0 : index
    %c0_15 = arith.constant 0 : index
    %c0_16 = arith.constant 0 : index
    %23 = vector.load %arg6[%c0_13, %c0_14, %c0_15, %c0_16] : memref<1x1x2x128xf32, #tpu.memory_space<vmem>>, vector<1x1x2x128xf32>
    %24 = vector.shape_cast %23 : vector<1x1x2x128xf32> to vector<2x128xf32>
    %25 = vector.shape_cast %22 : vector<2x128xf32> to vector<1x1x2x128xf32>
    tpu.vector_store %arg6[%c0_13, %c0_14, %c0_15, %c0_16], %25 {strides = array<i32>} : memref<1x1x2x128xf32, #tpu.memory_space<vmem>>, vector<1x1x2x128xf32>,
    return
  }
  func.func @transform_0(%arg0: i32, %arg1: i32) -> (i32, i32, i32, i32) {
    %c0_i32 = arith.constant 0 : i32
    %c0_i32_0 = arith.constant 0 : i32
    %c0_i32_1 = arith.constant 0 : i32
    return %arg0, %arg1, %c0_i32, %c0_i32_0 : i32, i32, i32, i32
  }
  func.func @transform_1(%arg0: i32, %arg1: i32) -> (i32, i32) {
    %c0_i32 = arith.constant 0 : i32
    %c0_i32_0 = arith.constant 0 : i32
    %c0_i32_1 = arith.constant 0 : i32
    return %c0_i32, %c0_i32_0 : i32, i32
  }
  func.func @transform_2(%arg0: i32, %arg1: i32) -> (i32, i32) {
    %c0_i32 = arith.constant 0 : i32
    %c0_i32_0 = arith.constant 0 : i32
    %c0_i32_1 = arith.constant 0 : i32
    return %c0_i32, %c0_i32_0 : i32, i32
  }
  func.func @transform_3(%arg0: i32, %arg1: i32) -> (i32, i32, i32, i32) {
    %c0_i32 = arith.constant 0 : i32
    %c0_i32_0 = arith.constant 0 : i32
    %c0_i32_1 = arith.constant 0 : i32
    %c0_i32_2 = arith.constant 0 : i32
    return %arg0, %c0_i32, %c0_i32_0, %c0_i32_1 : i32, i32, i32, i32
  }
  func.func @transform_4(%arg0: i32, %arg1: i32) -> (i32, i32, i32, i32) {
    %c0_i32 = arith.constant 0 : i32
    %c0_i32_0 = arith.constant 0 : i32
    %c0_i32_1 = arith.constant 0 : i32
    return %arg0, %arg1, %c0_i32, %c0_i32_0 : i32, i32, i32, i32
  }
}

module attributes {stable_mosaic.version = 11 : i64} {
  func.func @kernel(%arg0: i32, %arg1: i32, %arg2: memref<1x10x8x128xf32, #tpu.memory_space<vmem>>, %arg3: memref<1x128xf32, #tpu.memory_space<vmem>>, %arg4: memref<1x128xf32, #tpu.memory_space<vmem>>, %arg5: memref<9x128x128xf32, #tpu.memory_space<vmem>>, %arg6: memref<1x128xf32, #tpu.memory_space<vmem>>, %arg7: memref<1x8x8x128xf32, #tpu.memory_space<vmem>>, %arg8: memref<1x1x2x128xf32, #tpu.memory_space<vmem>>) attributes {dimension_semantics = [#tpu.dimension_semantics<parallel>, #tpu.dimension_semantics<arbitrary>], iteration_bounds = array<i64: 2, 1>, scalar_prefetch = 0 : i64, scratch_operands = 0 : i64, tpu.core_type = #tpu.core_type<tc>, window_params = [{transform_indices = @transform_0, window_bounds = array<i64: 1, 10, 8, 128>}, {pipeline_mode = #tpu.pipeline_mode<synchronous>, transform_indices = @transform_1, window_bounds = array<i64: 1, 128>}, {pipeline_mode = #tpu.pipeline_mode<synchronous>, transform_indices = @transform_2, window_bounds = array<i64: 1, 128>}, {pipeline_mode = #tpu.pipeline_mode<synchronous>, transform_indices = @transform_3, window_bounds = array<i64: 9, 128, 128>}, {pipeline_mode = #tpu.pipeline_mode<synchronous>, transform_indices = @transform_4, window_bounds = array<i64: 1, 128>}, {transform_indices = @transform_5, window_bounds = array<i64: 1, 8, 8, 128>}, {transform_indices = @transform_6, window_bounds = array<i64: 1, 1, 2, 128>}]} {
    %c8_i32 = arith.constant 8 : i32
    %0 = arith.muli %arg1, %c8_i32 : i32
    %1 = tpu.assume_multiple %0, 8 : i32
    %c0 = arith.constant 0 : index
    %2 = arith.index_cast %1 : i32 to index
    %c0_0 = arith.constant 0 : index
    %c0_1 = arith.constant 0 : index
    %3 = vector.load %arg2[%c0, %2, %c0_0, %c0_1] : memref<1x10x8x128xf32, #tpu.memory_space<vmem>>, vector<1x10x8x128xf32>
    %4 = vector.shape_cast %3 : vector<1x10x8x128xf32> to vector<10x8x128xf32>
    %c0_2 = arith.constant 0 : index
    %c0_3 = arith.constant 0 : index
    %5 = vector.load %arg3[%c0_2, %c0_3] : memref<1x128xf32, #tpu.memory_space<vmem>>, vector<1x128xf32>
    %6 = vector.shape_cast %5 : vector<1x128xf32> to vector<1x1x128xf32>
    %7 = vector.broadcast %6 : vector<1x1x128xf32> to vector<10x8x128xf32>
    %8 = arith.mulf %4, %7 : vector<10x8x128xf32>
    %c0_4 = arith.constant 0 : index
    %c0_5 = arith.constant 0 : index
    %9 = vector.load %arg4[%c0_4, %c0_5] : memref<1x128xf32, #tpu.memory_space<vmem>>, vector<1x128xf32>
    %10 = vector.shape_cast %9 : vector<1x128xf32> to vector<1x1x128xf32>
    %11 = vector.broadcast %10 : vector<1x1x128xf32> to vector<10x8x128xf32>
    %12 = arith.addf %8, %11 : vector<10x8x128xf32>
    %cst = arith.constant 0.000000e+00 : f32
    %13 = vector.broadcast %cst : f32 to vector<10x8x128xf32>
    %14 = arith.maximumf %12, %13 : vector<10x8x128xf32>
    %15 = tpu.iota {dimensions = array<i32: 0>} : vector<10x8x1xi32>
    %16 = vector.broadcast %1 : i32 to vector<10x8x1xi32>
    %17 = arith.addi %16, %15 : vector<10x8x1xi32>
    %c0_i32 = arith.constant 0 : i32
    %18 = vector.broadcast %c0_i32 : i32 to vector<10x8x1xi32>
    %19 = arith.cmpi sgt, %17, %18 : vector<10x8x1xi32>
    %c9_i32 = arith.constant 9 : i32
    %20 = vector.broadcast %c9_i32 : i32 to vector<10x8x1xi32>
    %21 = arith.cmpi slt, %17, %20 : vector<10x8x1xi32>
    %22 = arith.andi %19, %21 : vector<10x8x1xi1>
    %cst_6 = arith.constant 0.000000e+00 : f32
    %23 = vector.shape_cast %22 : vector<10x8x1xi1> to vector<10x8x1xi1>
    %24 = vector.broadcast %23 : vector<10x8x1xi1> to vector<10x8x128xi1>
    %25 = vector.broadcast %cst_6 : f32 to vector<10x8x128xf32>
    %26 = arith.select %24, %14, %25 : vector<10x8x128xi1>, vector<10x8x128xf32>
    %cst_7 = arith.constant 0.000000e+00 : f32
    %27 = vector.broadcast %cst_7 : f32 to vector<10x1x128xf32>
    %28 = vector.extract_strided_slice %26 {offsets = [0, 0, 0], sizes = [10, 7, 128], strides = [1, 1, 1]} : vector<10x8x128xf32> to vector<10x7x128xf32>
    %29 = tpu.concatenate %27, %28 in 1 : vector<10x1x128xf32>, vector<10x7x128xf32> -> vector<10x8x128xf32>
    %30 = vector.extract_strided_slice %26 {offsets = [0, 1, 0], sizes = [10, 7, 128], strides = [1, 1, 1]} : vector<10x8x128xf32> to vector<10x7x128xf32>
    %31 = tpu.concatenate %30, %27 in 1 : vector<10x7x128xf32>, vector<10x1x128xf32> -> vector<10x8x128xf32>
    %32 = vector.extract_strided_slice %29 {offsets = [0, 0, 0], sizes = [8, 8, 128], strides = [1, 1, 1]} : vector<10x8x128xf32> to vector<8x8x128xf32>
    %33 = vector.shape_cast %32 : vector<8x8x128xf32> to vector<64x128xf32>
    %c0_8 = arith.constant 0 : index
    %c0_9 = arith.constant 0 : index
    %c0_10 = arith.constant 0 : index
    %34 = vector.load %arg5[%c0_8, %c0_9, %c0_10] : memref<9x128x128xf32, #tpu.memory_space<vmem>>, vector<1x128x128xf32>
    %35 = vector.shape_cast %34 : vector<1x128x128xf32> to vector<128x128xf32>
    %cst_11 = arith.constant dense<0.000000e+00> : vector<64x128xf32>
    %36 = tpu.matmul %33, %35, %cst_11 {dimension_numbers = #tpu.dot_dimension_numbers<[1], [0], [0], [1], [0, 0, 1, 1], [], []>} : vector<64x128xf32>, vector<128x128xf32>, vector<64x128xf32> -> vector<64x128xf32>
    %37 = vector.extract_strided_slice %26 {offsets = [0, 0, 0], sizes = [8, 8, 128], strides = [1, 1, 1]} : vector<10x8x128xf32> to vector<8x8x128xf32>
    %38 = vector.shape_cast %37 : vector<8x8x128xf32> to vector<64x128xf32>
    %c1 = arith.constant 1 : index
    %c0_12 = arith.constant 0 : index
    %c0_13 = arith.constant 0 : index
    %39 = vector.load %arg5[%c1, %c0_12, %c0_13] : memref<9x128x128xf32, #tpu.memory_space<vmem>>, vector<1x128x128xf32>
    %40 = vector.shape_cast %39 : vector<1x128x128xf32> to vector<128x128xf32>
    %cst_14 = arith.constant dense<0.000000e+00> : vector<64x128xf32>
    %41 = tpu.matmul %38, %40, %cst_14 {dimension_numbers = #tpu.dot_dimension_numbers<[1], [0], [0], [1], [0, 0, 1, 1], [], []>} : vector<64x128xf32>, vector<128x128xf32>, vector<64x128xf32> -> vector<64x128xf32>
    %42 = arith.addf %36, %41 : vector<64x128xf32>
    %43 = vector.extract_strided_slice %31 {offsets = [0, 0, 0], sizes = [8, 8, 128], strides = [1, 1, 1]} : vector<10x8x128xf32> to vector<8x8x128xf32>
    %44 = vector.shape_cast %43 : vector<8x8x128xf32> to vector<64x128xf32>
    %c2 = arith.constant 2 : index
    %c0_15 = arith.constant 0 : index
    %c0_16 = arith.constant 0 : index
    %45 = vector.load %arg5[%c2, %c0_15, %c0_16] : memref<9x128x128xf32, #tpu.memory_space<vmem>>, vector<1x128x128xf32>
    %46 = vector.shape_cast %45 : vector<1x128x128xf32> to vector<128x128xf32>
    %cst_17 = arith.constant dense<0.000000e+00> : vector<64x128xf32>
    %47 = tpu.matmul %44, %46, %cst_17 {dimension_numbers = #tpu.dot_dimension_numbers<[1], [0], [0], [1], [0, 0, 1, 1], [], []>} : vector<64x128xf32>, vector<128x128xf32>, vector<64x128xf32> -> vector<64x128xf32>
    %48 = arith.addf %42, %47 : vector<64x128xf32>
    %49 = vector.extract_strided_slice %29 {offsets = [1, 0, 0], sizes = [8, 8, 128], strides = [1, 1, 1]} : vector<10x8x128xf32> to vector<8x8x128xf32>
    %50 = vector.shape_cast %49 : vector<8x8x128xf32> to vector<64x128xf32>
    %c3 = arith.constant 3 : index
    %c0_18 = arith.constant 0 : index
    %c0_19 = arith.constant 0 : index
    %51 = vector.load %arg5[%c3, %c0_18, %c0_19] : memref<9x128x128xf32, #tpu.memory_space<vmem>>, vector<1x128x128xf32>
    %52 = vector.shape_cast %51 : vector<1x128x128xf32> to vector<128x128xf32>
    %cst_20 = arith.constant dense<0.000000e+00> : vector<64x128xf32>
    %53 = tpu.matmul %50, %52, %cst_20 {dimension_numbers = #tpu.dot_dimension_numbers<[1], [0], [0], [1], [0, 0, 1, 1], [], []>} : vector<64x128xf32>, vector<128x128xf32>, vector<64x128xf32> -> vector<64x128xf32>
    %54 = arith.addf %48, %53 : vector<64x128xf32>
    %55 = vector.extract_strided_slice %26 {offsets = [1, 0, 0], sizes = [8, 8, 128], strides = [1, 1, 1]} : vector<10x8x128xf32> to vector<8x8x128xf32>
    %56 = vector.shape_cast %55 : vector<8x8x128xf32> to vector<64x128xf32>
    %c4 = arith.constant 4 : index
    %c0_21 = arith.constant 0 : index
    %c0_22 = arith.constant 0 : index
    %57 = vector.load %arg5[%c4, %c0_21, %c0_22] : memref<9x128x128xf32, #tpu.memory_space<vmem>>, vector<1x128x128xf32>
    %58 = vector.shape_cast %57 : vector<1x128x128xf32> to vector<128x128xf32>
    %cst_23 = arith.constant dense<0.000000e+00> : vector<64x128xf32>
    %59 = tpu.matmul %56, %58, %cst_23 {dimension_numbers = #tpu.dot_dimension_numbers<[1], [0], [0], [1], [0, 0, 1, 1], [], []>} : vector<64x128xf32>, vector<128x128xf32>, vector<64x128xf32> -> vector<64x128xf32>
    %60 = arith.addf %54, %59 : vector<64x128xf32>
    %61 = vector.extract_strided_slice %31 {offsets = [1, 0, 0], sizes = [8, 8, 128], strides = [1, 1, 1]} : vector<10x8x128xf32> to vector<8x8x128xf32>
    %62 = vector.shape_cast %61 : vector<8x8x128xf32> to vector<64x128xf32>
    %c5 = arith.constant 5 : index
    %c0_24 = arith.constant 0 : index
    %c0_25 = arith.constant 0 : index
    %63 = vector.load %arg5[%c5, %c0_24, %c0_25] : memref<9x128x128xf32, #tpu.memory_space<vmem>>, vector<1x128x128xf32>
    %64 = vector.shape_cast %63 : vector<1x128x128xf32> to vector<128x128xf32>
    %cst_26 = arith.constant dense<0.000000e+00> : vector<64x128xf32>
    %65 = tpu.matmul %62, %64, %cst_26 {dimension_numbers = #tpu.dot_dimension_numbers<[1], [0], [0], [1], [0, 0, 1, 1], [], []>} : vector<64x128xf32>, vector<128x128xf32>, vector<64x128xf32> -> vector<64x128xf32>
    %66 = arith.addf %60, %65 : vector<64x128xf32>
    %67 = vector.extract_strided_slice %29 {offsets = [2, 0, 0], sizes = [8, 8, 128], strides = [1, 1, 1]} : vector<10x8x128xf32> to vector<8x8x128xf32>
    %68 = vector.shape_cast %67 : vector<8x8x128xf32> to vector<64x128xf32>
    %c6 = arith.constant 6 : index
    %c0_27 = arith.constant 0 : index
    %c0_28 = arith.constant 0 : index
    %69 = vector.load %arg5[%c6, %c0_27, %c0_28] : memref<9x128x128xf32, #tpu.memory_space<vmem>>, vector<1x128x128xf32>
    %70 = vector.shape_cast %69 : vector<1x128x128xf32> to vector<128x128xf32>
    %cst_29 = arith.constant dense<0.000000e+00> : vector<64x128xf32>
    %71 = tpu.matmul %68, %70, %cst_29 {dimension_numbers = #tpu.dot_dimension_numbers<[1], [0], [0], [1], [0, 0, 1, 1], [], []>} : vector<64x128xf32>, vector<128x128xf32>, vector<64x128xf32> -> vector<64x128xf32>
    %72 = arith.addf %66, %71 : vector<64x128xf32>
    %73 = vector.extract_strided_slice %26 {offsets = [2, 0, 0], sizes = [8, 8, 128], strides = [1, 1, 1]} : vector<10x8x128xf32> to vector<8x8x128xf32>
    %74 = vector.shape_cast %73 : vector<8x8x128xf32> to vector<64x128xf32>
    %c7 = arith.constant 7 : index
    %c0_30 = arith.constant 0 : index
    %c0_31 = arith.constant 0 : index
    %75 = vector.load %arg5[%c7, %c0_30, %c0_31] : memref<9x128x128xf32, #tpu.memory_space<vmem>>, vector<1x128x128xf32>
    %76 = vector.shape_cast %75 : vector<1x128x128xf32> to vector<128x128xf32>
    %cst_32 = arith.constant dense<0.000000e+00> : vector<64x128xf32>
    %77 = tpu.matmul %74, %76, %cst_32 {dimension_numbers = #tpu.dot_dimension_numbers<[1], [0], [0], [1], [0, 0, 1, 1], [], []>} : vector<64x128xf32>, vector<128x128xf32>, vector<64x128xf32> -> vector<64x128xf32>
    %78 = arith.addf %72, %77 : vector<64x128xf32>
    %79 = vector.extract_strided_slice %31 {offsets = [2, 0, 0], sizes = [8, 8, 128], strides = [1, 1, 1]} : vector<10x8x128xf32> to vector<8x8x128xf32>
    %80 = vector.shape_cast %79 : vector<8x8x128xf32> to vector<64x128xf32>
    %c8 = arith.constant 8 : index
    %c0_33 = arith.constant 0 : index
    %c0_34 = arith.constant 0 : index
    %81 = vector.load %arg5[%c8, %c0_33, %c0_34] : memref<9x128x128xf32, #tpu.memory_space<vmem>>, vector<1x128x128xf32>
    %82 = vector.shape_cast %81 : vector<1x128x128xf32> to vector<128x128xf32>
    %cst_35 = arith.constant dense<0.000000e+00> : vector<64x128xf32>
    %83 = tpu.matmul %80, %82, %cst_35 {dimension_numbers = #tpu.dot_dimension_numbers<[1], [0], [0], [1], [0, 0, 1, 1], [], []>} : vector<64x128xf32>, vector<128x128xf32>, vector<64x128xf32> -> vector<64x128xf32>
    %84 = arith.addf %78, %83 : vector<64x128xf32>
    %c0_36 = arith.constant 0 : index
    %c0_37 = arith.constant 0 : index
    %85 = vector.load %arg6[%c0_36, %c0_37] : memref<1x128xf32, #tpu.memory_space<vmem>>, vector<1x128xf32>
    %86 = vector.broadcast %85 : vector<1x128xf32> to vector<64x128xf32>
    %87 = arith.addf %84, %86 : vector<64x128xf32>
    %88 = vector.shape_cast %87 : vector<64x128xf32> to vector<1x8x8x128xf32>
    %c0_38 = arith.constant 0 : index
    %c0_39 = arith.constant 0 : index
    %c0_40 = arith.constant 0 : index
    %c0_41 = arith.constant 0 : index
    %89 = vector.load %arg7[%c0_38, %c0_39, %c0_40, %c0_41] : memref<1x8x8x128xf32, #tpu.memory_space<vmem>>, vector<1x8x8x128xf32>
    tpu.vector_store %arg7[%c0_38, %c0_39, %c0_40, %c0_41], %88 {strides = array<i32>} : memref<1x8x8x128xf32, #tpu.memory_space<vmem>>, vector<1x8x8x128xf32>,
    %cst_42 = arith.constant dense<0.000000e+00> : vector<128xf32>
    %90 = vector.multi_reduction <add>, %87, %cst_42 [0] : vector<64x128xf32> to vector<128xf32>
    %91 = vector.shape_cast %90 : vector<128xf32> to vector<1x128xf32>
    %92 = arith.mulf %87, %87 : vector<64x128xf32>
    %cst_43 = arith.constant dense<0.000000e+00> : vector<128xf32>
    %93 = vector.multi_reduction <add>, %92, %cst_43 [0] : vector<64x128xf32> to vector<128xf32>
    %94 = vector.shape_cast %93 : vector<128xf32> to vector<1x128xf32>
    %95 = tpu.concatenate %91, %94 in 0 : vector<1x128xf32>, vector<1x128xf32> -> vector<2x128xf32>
    %c0_44 = arith.constant 0 : index
    %c0_45 = arith.constant 0 : index
    %c0_46 = arith.constant 0 : index
    %c0_47 = arith.constant 0 : index
    %96 = vector.load %arg8[%c0_44, %c0_45, %c0_46, %c0_47] : memref<1x1x2x128xf32, #tpu.memory_space<vmem>>, vector<1x1x2x128xf32>
    %97 = vector.shape_cast %96 : vector<1x1x2x128xf32> to vector<2x128xf32>
    %98 = vector.shape_cast %95 : vector<2x128xf32> to vector<1x1x2x128xf32>
    tpu.vector_store %arg8[%c0_44, %c0_45, %c0_46, %c0_47], %98 {strides = array<i32>} : memref<1x1x2x128xf32, #tpu.memory_space<vmem>>, vector<1x1x2x128xf32>,
    return
  }
  func.func @transform_0(%arg0: i32, %arg1: i32) -> (i32, i32, i32, i32) {
    %c0_i32 = arith.constant 0 : i32
    %c0_i32_0 = arith.constant 0 : i32
    %c0_i32_1 = arith.constant 0 : i32
    %c0_i32_2 = arith.constant 0 : i32
    return %arg0, %c0_i32, %c0_i32_0, %c0_i32_1 : i32, i32, i32, i32
  }
  func.func @transform_1(%arg0: i32, %arg1: i32) -> (i32, i32) {
    %c0_i32 = arith.constant 0 : i32
    %c0_i32_0 = arith.constant 0 : i32
    %c0_i32_1 = arith.constant 0 : i32
    return %c0_i32, %c0_i32_0 : i32, i32
  }
  func.func @transform_2(%arg0: i32, %arg1: i32) -> (i32, i32) {
    %c0_i32 = arith.constant 0 : i32
    %c0_i32_0 = arith.constant 0 : i32
    %c0_i32_1 = arith.constant 0 : i32
    return %c0_i32, %c0_i32_0 : i32, i32
  }
  func.func @transform_3(%arg0: i32, %arg1: i32) -> (i32, i32, i32) {
    %c0_i32 = arith.constant 0 : i32
    %c0_i32_0 = arith.constant 0 : i32
    %c0_i32_1 = arith.constant 0 : i32
    %c0_i32_2 = arith.constant 0 : i32
    return %c0_i32, %c0_i32_0, %c0_i32_1 : i32, i32, i32
  }
  func.func @transform_4(%arg0: i32, %arg1: i32) -> (i32, i32) {
    %c0_i32 = arith.constant 0 : i32
    %c0_i32_0 = arith.constant 0 : i32
    %c0_i32_1 = arith.constant 0 : i32
    return %c0_i32, %c0_i32_0 : i32, i32
  }
  func.func @transform_5(%arg0: i32, %arg1: i32) -> (i32, i32, i32, i32) {
    %c0_i32 = arith.constant 0 : i32
    %c0_i32_0 = arith.constant 0 : i32
    %c0_i32_1 = arith.constant 0 : i32
    return %arg0, %arg1, %c0_i32, %c0_i32_0 : i32, i32, i32, i32
  }
  func.func @transform_6(%arg0: i32, %arg1: i32) -> (i32, i32, i32, i32) {
    %c0_i32 = arith.constant 0 : i32
    %c0_i32_0 = arith.constant 0 : i32
    %c0_i32_1 = arith.constant 0 : i32
    return %arg0, %arg1, %c0_i32, %c0_i32_0 : i32, i32, i32, i32
  }
}

module attributes {stable_mosaic.version = 11 : i64} {
  func.func @_finalize_kernel(%arg0: i32, %arg1: i32, %arg2: memref<1x8x8x128xf32, #tpu.memory_space<vmem>>, %arg3: memref<1x8x8x128xf32, #tpu.memory_space<vmem>>, %arg4: memref<1x128xf32, #tpu.memory_space<vmem>>, %arg5: memref<1x128xf32, #tpu.memory_space<vmem>>, %arg6: memref<1x8x8x128xf32, #tpu.memory_space<vmem>>) attributes {dimension_semantics = [#tpu.dimension_semantics<parallel>, #tpu.dimension_semantics<arbitrary>], iteration_bounds = array<i64: 2, 1>, scalar_prefetch = 0 : i64, scratch_operands = 0 : i64, tpu.core_type = #tpu.core_type<tc>, window_params = [{transform_indices = @transform_0, window_bounds = array<i64: 1, 8, 8, 128>}, {transform_indices = @transform_1, window_bounds = array<i64: 1, 8, 8, 128>}, {pipeline_mode = #tpu.pipeline_mode<synchronous>, transform_indices = @transform_2, window_bounds = array<i64: 1, 128>}, {pipeline_mode = #tpu.pipeline_mode<synchronous>, transform_indices = @transform_3, window_bounds = array<i64: 1, 128>}, {transform_indices = @transform_4, window_bounds = array<i64: 1, 8, 8, 128>}]} {
    %c0 = arith.constant 0 : index
    %c0_0 = arith.constant 0 : index
    %c0_1 = arith.constant 0 : index
    %c0_2 = arith.constant 0 : index
    %0 = vector.load %arg2[%c0, %c0_0, %c0_1, %c0_2] : memref<1x8x8x128xf32, #tpu.memory_space<vmem>>, vector<1x8x8x128xf32>
    %c0_3 = arith.constant 0 : index
    %c0_4 = arith.constant 0 : index
    %1 = vector.load %arg4[%c0_3, %c0_4] : memref<1x128xf32, #tpu.memory_space<vmem>>, vector<1x128xf32>
    %2 = vector.shape_cast %1 : vector<1x128xf32> to vector<1x1x1x128xf32>
    %3 = vector.broadcast %2 : vector<1x1x1x128xf32> to vector<1x8x8x128xf32>
    %4 = arith.mulf %0, %3 : vector<1x8x8x128xf32>
    %c0_5 = arith.constant 0 : index
    %c0_6 = arith.constant 0 : index
    %5 = vector.load %arg5[%c0_5, %c0_6] : memref<1x128xf32, #tpu.memory_space<vmem>>, vector<1x128xf32>
    %6 = vector.shape_cast %5 : vector<1x128xf32> to vector<1x1x1x128xf32>
    %7 = vector.broadcast %6 : vector<1x1x1x128xf32> to vector<1x8x8x128xf32>
    %8 = arith.addf %4, %7 : vector<1x8x8x128xf32>
    %c0_7 = arith.constant 0 : index
    %c0_8 = arith.constant 0 : index
    %c0_9 = arith.constant 0 : index
    %c0_10 = arith.constant 0 : index
    %9 = vector.load %arg3[%c0_7, %c0_8, %c0_9, %c0_10] : memref<1x8x8x128xf32, #tpu.memory_space<vmem>>, vector<1x8x8x128xf32>
    %10 = arith.addf %8, %9 : vector<1x8x8x128xf32>
    %cst = arith.constant 0.000000e+00 : f32
    %11 = vector.broadcast %cst : f32 to vector<1x8x8x128xf32>
    %12 = arith.maximumf %10, %11 : vector<1x8x8x128xf32>
    %c0_11 = arith.constant 0 : index
    %c0_12 = arith.constant 0 : index
    %c0_13 = arith.constant 0 : index
    %c0_14 = arith.constant 0 : index
    %13 = vector.load %arg6[%c0_11, %c0_12, %c0_13, %c0_14] : memref<1x8x8x128xf32, #tpu.memory_space<vmem>>, vector<1x8x8x128xf32>
    tpu.vector_store %arg6[%c0_11, %c0_12, %c0_13, %c0_14], %12 {strides = array<i32>} : memref<1x8x8x128xf32, #tpu.memory_space<vmem>>, vector<1x8x8x128xf32>,
    return
  }
  func.func @transform_0(%arg0: i32, %arg1: i32) -> (i32, i32, i32, i32) {
    %c0_i32 = arith.constant 0 : i32
    %c0_i32_0 = arith.constant 0 : i32
    %c0_i32_1 = arith.constant 0 : i32
    return %arg0, %arg1, %c0_i32, %c0_i32_0 : i32, i32, i32, i32
  }
  func.func @transform_1(%arg0: i32, %arg1: i32) -> (i32, i32, i32, i32) {
    %c0_i32 = arith.constant 0 : i32
    %c0_i32_0 = arith.constant 0 : i32
    %c0_i32_1 = arith.constant 0 : i32
    return %arg0, %arg1, %c0_i32, %c0_i32_0 : i32, i32, i32, i32
  }
  func.func @transform_2(%arg0: i32, %arg1: i32) -> (i32, i32) {
    %c0_i32 = arith.constant 0 : i32
    %c0_i32_0 = arith.constant 0 : i32
    %c0_i32_1 = arith.constant 0 : i32
    return %c0_i32, %c0_i32_0 : i32, i32
  }
  func.func @transform_3(%arg0: i32, %arg1: i32) -> (i32, i32) {
    %c0_i32 = arith.constant 0 : i32
    %c0_i32_0 = arith.constant 0 : i32
    %c0_i32_1 = arith.constant 0 : i32
    return %c0_i32, %c0_i32_0 : i32, i32
  }
  func.func @transform_4(%arg0: i32, %arg1: i32) -> (i32, i32, i32, i32) {
    %c0_i32 = arith.constant 0 : i32
    %c0_i32_0 = arith.constant 0 : i32
    %c0_i32_1 = arith.constant 0 : i32
    return %arg0, %arg1, %c0_i32, %c0_i32_0 : i32, i32, i32, i32
  }
}

</mosaic_0001>

<bundles_post_ra>
// kernel: residual_block_forward.5
= control target key start
LH: loop header
LB: loop body
LE: loop exit
PB: predicated region body
PF: predicated region fallthrough
CT: control target
= control target key end

     0   :  { %s539_s15 = smov 0   ;;  %s541_s16 = smov 0   ;;  %s596_s0 = inlined_call_operand.vmem [shape: f32[2,8,8,128], index: 0, kind: input, shape index: {}]   ;;  %s597_s1 = inlined_call_operand.vmem [shape: f32[2,8,8,128], index: 1, kind: input, shape index: {}]   ;;  %s598_s2 = inlined_call_operand.vmem [shape: f32[1,128], index: 2, kind: input, shape index: {}]   ;;  %s599_s3 = inlined_call_operand.vmem [shape: f32[1,128], index: 3, kind: input, shape index: {}]   ;;  %s600_s4 = inlined_call_operand.vmem [shape: f32[2,8,8,128], index: 4, kind: output, shape index: {}]  }
   0x1   :  { %s543_s17 = smov 0  }
   0x2 LB: > { %s26_s18 = sadd.s32 1, %s508_s16  ;;  %p452_p0 = scmp.ge.s32.totalorder %s512_s17, 1  ;;  %s512_s17 = sphi %s543_s17, %s14_s17   ;;  %s508_s16 = sphi %s541_s16, %s602_s16   ;;  %s504_s15 = sphi %s539_s15, %s601_s15  }
   0x3   : > { %p28_p1 = scmp.ge.s32.totalorder %s26_s18, 2  ;;  %p200_p2 = scmp.lt.s32.totalorder %s512_s17, 3 }
   0x5   : > { %s604_s18 = smov (%p28_p1, %s26_s18), 0  ;;  %p201_p3 = pnand %p452_p0, %p200_p2 }
   0x6   : > { %p244_p4 = scmp.lt.s32.totalorder (!%p201_p3), %s504_s15, 1 }
   0x7   : > { %204 = sbr.rel (%p201_p3) target bundleno = 30 (0x1e), region = 36 }
   0xc   : > { %s606_s15 = smov (!%p244_p4, %s504_s15), 1  ;;  %v459_v0 = vld [vmem:[%s598_s2] ss:$0 sm:$0xff] }
   0xd   : > { %s557_s19 = sshll.u32 %s606_s15, 6  ;;  %v460_v2 = vld [vmem:[%s599_s3] ss:$0 sm:$0xff] }
   0xe   : > { %s251_s24 = scalar_lea.vmem %s596_s0, %s557_s19  ;;  %s570_s27 = scalar_lea.vmem %s597_s1, %s557_s19 }
   0xf   : > { %v273_v1 = vld [vmem:[%s251_s24] sm:$0xff]  ;;  %v274_v3 = vld [vmem:[%s251_s24 + $0x8] sm:$0xff]  ;;  %v275_v7 = vld [vmem:[%s251_s24 + $0x10] sm:$0xff]  ;;  %s271_s6 = scalar_lea.vmem %s600_s4, %s557_s19 }
  0x10   : > { %v288_v4 = vmul.f32 %v459_v0, %v273_v1  ;;  %v311_v5 = vld [vmem:[%s570_s27] sm:$0xff]  ;;  %v289_v6 = vmul.f32 %v459_v0, %v274_v3  ;;  %v312_v8 = vld [vmem:[%s570_s27 + $0x8] sm:$0xff]  ;;  %v290_v9 = vmul.f32 %v459_v0, %v275_v7  ;;  %v276_v10 = vld [vmem:[%s251_s24 + $0x18] sm:$0xff] }
  0x11   : > { %v277_v11 = vld [vmem:[%s251_s24 + $0x20] sm:$0xff]  ;;  %v313_v14 = vld [vmem:[%s570_s27 + $0x10] sm:$0xff]  ;;  %v291_v15 = vmul.f32 %v459_v0, %v276_v10  ;;  %v314_v16 = vld [vmem:[%s570_s27 + $0x18] sm:$0xff] }
  0x12   : > { %v303_v12 = vadd.f32 %v460_v2, %v288_v4  ;;  %v304_v13 = vadd.f32 %v460_v2, %v289_v6  ;;  %v292_v17 = vmul.f32 %v459_v0, %v277_v11  ;;  %v278_v18 = vld [vmem:[%s251_s24 + $0x28] sm:$0xff]  ;;  %v305_v19 = vadd.f32 %v460_v2, %v290_v9  ;;  %v315_v20 = vld [vmem:[%s570_s27 + $0x20] sm:$0xff]  ;;  %v279_v22 = vld [vmem:[%s251_s24 + $0x30] sm:$0xff] }
  0x13   : > { %v293_v21 = vmul.f32 %v459_v0, %v278_v18  ;;  %v280_v23 = vld [vmem:[%s251_s24 + $0x38] sm:$0xff]  ;;  %v306_v26 = vadd.f32 %v460_v2, %v291_v15  ;;  %v316_v28 = vld [vmem:[%s570_s27 + $0x28] sm:$0xff]  ;;  %v294_v31 = vmul.f32 %v459_v0, %v279_v22  ;;  %v317_v37 = vld [vmem:[%s570_s27 + $0x30] sm:$0xff] }
  0x14   : > { %v319_v24 = vadd.f32 %v311_v5, %v303_v12  ;;  %v320_v25 = vadd.f32 %v312_v8, %v304_v13  ;;  %v307_v27 = vadd.f32 %v460_v2, %v292_v17  ;;  %v321_v29 = vadd.f32 %v313_v14, %v305_v19  ;;  %v318_v38 = vld [vmem:[%s570_s27 + $0x38] sm:$0xff] }
  0x15   : > { %v308_v30 = vadd.f32 %v460_v2, %v293_v21  ;;  %v295_v32 = vmul.f32 %v459_v0, %v280_v23  ;;  %v322_v35 = vadd.f32 %v314_v16, %v306_v26  ;;  %v309_v41 = vadd.f32 %v460_v2, %v294_v31 }
  0x16   : > { %v327_v33 = vmax.f32 %v319_v24, 0.0  ;;  %v328_v34 = vmax.f32 %v320_v25, 0.0  ;;  %v323_v36 = vadd.f32 %v315_v20, %v307_v27  ;;  %v329_v39 = vmax.f32 %v321_v29, 0.0 }
  0x17   : > { %v324_v40 = vadd.f32 %v316_v28, %v308_v30  ;;  %v310_v42 = vadd.f32 %v460_v2, %v295_v32  ;;  %v330_v43 = vmax.f32 %v322_v35, 0.0  ;;  %v325_v46 = vadd.f32 %v317_v37, %v309_v41 }
  0x18   : > { %335 = vst [vmem:[%s271_s6] sm:$0xff] %v327_v33  ;;  %336 = vst [vmem:[%s271_s6 + $0x8] sm:$0xff] %v328_v34  ;;  %v331_v44 = vmax.f32 %v323_v36, 0.0 }
  0x19   : > { %337 = vst [vmem:[%s271_s6 + $0x10] sm:$0xff] %v329_v39  ;;  %v332_v45 = vmax.f32 %v324_v40, 0.0  ;;  %v326_v47 = vadd.f32 %v318_v38, %v310_v42  ;;  %338 = vst [vmem:[%s271_s6 + $0x18] sm:$0xff] %v330_v43  ;;  %v333_v48 = vmax.f32 %v325_v46, 0.0 }
  0x1a   : > { %339 = vst [vmem:[%s271_s6 + $0x20] sm:$0xff] %v331_v44 }
  0x1b   : > { %340 = vst [vmem:[%s271_s6 + $0x28] sm:$0xff] %v332_v45  ;;  %v334_v49 = vmax.f32 %v326_v47, 0.0  ;;  %341 = vst [vmem:[%s271_s6 + $0x30] sm:$0xff] %v333_v48 }
  0x1d   : > { %342 = vst [vmem:[%s271_s6 + $0x38] sm:$0xff] %v334_v49 }
  0x1e PF: > { %s14_s17 = sadd.s32 1, %s512_s17   ;;  %s601_s15 = smov %s508_s16 }
  0x1f   : > { %p11_p5 = scmp.ge.s32.totalorder %s14_s17, 4   ;;  %s602_s16 = smov %s604_s18 }
  0x21   :  { %13 = sbr.rel (!%p11_p5) target bundleno = 2 (0x2), region = 69 }

// kernel: residual_block_forward.3
= control target key start
LH: loop header
LB: loop body
LE: loop exit
PB: predicated region body
PF: predicated region fallthrough
CT: control target
= control target key end

     0   :  { %s749_s15 = smov 0   ;;  %s751_s16 = smov 0   ;;  %s863_s0 = inlined_call_operand.vmem [shape: f32[2,8,8,128], index: 0, kind: input, shape index: {}]   ;;  %s864_s1 = inlined_call_operand.vmem [shape: f32[128,128], index: 1, kind: input, shape index: {}]   ;;  %s865_s2 = inlined_call_operand.vmem [shape: f32[1,128], index: 2, kind: input, shape index: {}]   ;;  %s866_s3 = inlined_call_operand.vmem [shape: f32[2,10,8,128], index: 3, kind: output, shape index: {0}]   ;;  %s867_s4 = inlined_call_operand.vmem [shape: f32[2,1,2,128], index: 4, kind: output, shape index: {1}]  }
   0x1   :  { %s753_s17 = smov 0  }
   0x2 LB: > { %s27_s18 = sadd.s32 1, %s717_s16  ;;  %p555_p0 = scmp.ge.s32.totalorder %s721_s17, 1  ;;  %s721_s17 = sphi %s753_s17, %s15_s17   ;;  %s717_s16 = sphi %s751_s16, %s869_s16   ;;  %s713_s15 = sphi %s749_s15, %s868_s15  }
   0x3   : > { %p29_p1 = scmp.ge.s32.totalorder %s27_s18, 2  ;;  %p186_p2 = scmp.lt.s32.totalorder %s721_s17, 3 }
   0x5   : > { %s871_s18 = smov (%p29_p1, %s27_s18), 0  ;;  %p187_p3 = pnand %p555_p0, %p186_p2 }
   0x6   : > { %p224_p4 = scmp.lt.s32.totalorder (!%p187_p3), %s713_s15, 1 }
   0x7   : > { %190 = sbr.rel (%p187_p3) target bundleno = 274 (0x112), region = 32 }
   0xc   : > { %v275_v0 = vld [vmem:[%s864_s1 + $0x78] sm:$0xff]  ;;  %v274_v1 = vld [vmem:[%s864_s1 + $0x70] sm:$0xff]  ;;  %v273_v2 = vld [vmem:[%s864_s1 + $0x68] sm:$0xff]  ;;  %s873_s15 = smov (!%p224_p4, %s713_s15), 1  ;;  %v723_v5 = vmov 0.0   ;;  %vm434_vm0 = vcmask 1040384  }
   0xd   : > { %597 = vmatprep.subr.mxu0 %v275_v0  ;;  %641 = vmatprep.subr.mxu1 %v275_v0  ;;  %v272_v3 = vld [vmem:[%s864_s1 + $0x60] sm:$0xff]  ;;  %s673_s27 = smul.u32 80, %s873_s15  ;;  %v271_v4 = vld [vmem:[%s864_s1 + $0x58] sm:$0xff]  ;;  %v270_v6 = vld [vmem:[%s864_s1 + $0x50] sm:$0xff]  ;;  %s572_s23 = sshll.u32 %s873_s15, 6 }
   0xe   : > { %598 = vmatpush3.msra.mxu0 %v275_v0  ;;  %657 = vmatpush3.msra.mxu1 %v275_v0  ;;  %v269_v7 = vld [vmem:[%s864_s1 + $0x48] sm:$0xff]  ;;  %v268_v8 = vld [vmem:[%s864_s1 + $0x40] sm:$0xff]  ;;  %v267_v9 = vld [vmem:[%s864_s1 + $0x38] sm:$0xff]  ;;  %s817_s28 = scalar_lea.vmem %s863_s0, %s572_s23 }
   0xf   : > { %599 = vmatprep.subr.mxu0 %v274_v1  ;;  %642 = vmatprep.subr.mxu1 %v274_v1  ;;  %s788_s6 = scalar_lea.vmem %s866_s3, %s673_s27  ;;  %v266_v10 = vld [vmem:[%s864_s1 + $0x30] sm:$0xff]  ;;  %v265_v11 = vld [vmem:[%s864_s1 + $0x28] sm:$0xff]  ;;  %v264_v12 = vld [vmem:[%s864_s1 + $0x20] sm:$0xff] }
  0x10   : > { %600 = vmatpush3.msra.mxu0 %v274_v1  ;;  %658 = vmatpush3.msra.mxu1 %v274_v1  ;;  %249 = vst [vmem:[%s788_s6] sm:$0xff] %v723_v5  ;;  %560 = vst [vmem:[%s788_s6 + $0x48] sm:$0xff] %v723_v5  ;;  %v263_v13 = vld [vmem:[%s864_s1 + $0x18] sm:$0xff]  ;;  %v262_v14 = vld [vmem:[%s864_s1 + $0x10] sm:$0xff] }
  0x11   : > { %601 = vmatprep.subr.mxu0 %v273_v2  ;;  %643 = vmatprep.subr.mxu1 %v273_v2  ;;  %v252_v15 = vld [vmem:[%s817_s28] sm:$0xff]  ;;  %v261_v16 = vld [vmem:[%s864_s1 + $0x8] sm:$0xff]  ;;  %v254_v19 = vld [vmem:[%s817_s28 + $0x10] sm:$0xff] }
  0x12   : > { %602 = vmatpush3.msra.mxu0 %v273_v2  ;;  %659 = vmatpush3.msra.mxu1 %v273_v2  ;;  %v260_v17 = vld [vmem:[%s864_s1] sm:$0xff]  ;;  %v253_v18 = vld [vmem:[%s817_s28 + $0x8] sm:$0xff]  ;;  %v258_v22 = vld [vmem:[%s817_s28 + $0x30] sm:$0xff] }
  0x13   : > { %603 = vmatprep.subr.mxu0 %v272_v3  ;;  %644 = vmatprep.subr.mxu1 %v272_v3  ;;  %v256_v20 = vld [vmem:[%s817_s28 + $0x20] sm:$0xff]  ;;  %v257_v21 = vld [vmem:[%s817_s28 + $0x28] sm:$0xff]  ;;  %v255_v23 = vld [vmem:[%s817_s28 + $0x18] sm:$0xff] }
  0x14   : > { %604 = vmatpush3.msra.mxu0 %v272_v3  ;;  %660 = vmatpush3.msra.mxu1 %v272_v3  ;;  %v259_v24 = vld [vmem:[%s817_s28 + $0x38] sm:$0xff]  ;;  %v561_v25 = vld [vmem:[%s865_s2] ss:$0 sm:$0xff] }
  0x15   : > { %605 = vmatprep.subr.mxu0 %v271_v4  ;;  %645 = vmatprep.subr.mxu1 %v271_v4 }
  0x16   : > { %606 = vmatpush3.msra.mxu0 %v271_v4  ;;  %661 = vmatpush3.msra.mxu1 %v271_v4 }
  0x17   : > { %607 = vmatprep.subr.mxu0 %v270_v6  ;;  %646 = vmatprep.subr.mxu1 %v270_v6 }
  0x18   : > { %608 = vmatpush3.msra.mxu0 %v270_v6  ;;  %662 = vmatpush3.msra.mxu1 %v270_v6 }
  0x19   : > { %609 = vmatprep.subr.mxu0 %v269_v7  ;;  %647 = vmatprep.subr.mxu1 %v269_v7 }
  0x1a   : > { %610 = vmatpush3.msra.mxu0 %v269_v7  ;;  %663 = vmatpush3.msra.mxu1 %v269_v7 }
  0x1b   : > { %611 = vmatprep.subr.mxu0 %v268_v8  ;;  %648 = vmatprep.subr.mxu1 %v268_v8 }
  0x1c   : > { %612 = vmatpush3.msra.mxu0 %v268_v8  ;;  %664 = vmatpush3.msra.mxu1 %v268_v8 }
  0x1d   : > { %613 = vmatprep.subr.mxu0 %v267_v9  ;;  %649 = vmatprep.subr.mxu1 %v267_v9 }
  0x1e   : > { %614 = vmatpush3.msra.mxu0 %v267_v9  ;;  %665 = vmatpush3.msra.mxu1 %v267_v9 }
  0x1f   : > { %615 = vmatprep.subr.mxu0 %v266_v10  ;;  %650 = vmatprep.subr.mxu1 %v266_v10 }
  0x20   : > { %616 = vmatpush3.msra.mxu0 %v266_v10  ;;  %666 = vmatpush3.msra.mxu1 %v266_v10 }
  0x21   : > { %617 = vmatprep.subr.mxu0 %v265_v11  ;;  %651 = vmatprep.subr.mxu1 %v265_v11 }
  0x22   : > { %618 = vmatpush3.msra.mxu0 %v265_v11  ;;  %667 = vmatpush3.msra.mxu1 %v265_v11 }
  0x23   : > { %619 = vmatprep.subr.mxu0 %v264_v12  ;;  %652 = vmatprep.subr.mxu1 %v264_v12 }
  0x24   : > { %620 = vmatpush3.msra.mxu0 %v264_v12  ;;  %668 = vmatpush3.msra.mxu1 %v264_v12 }
  0x25   : > { %621 = vmatprep.subr.mxu0 %v263_v13  ;;  %653 = vmatprep.subr.mxu1 %v263_v13 }
  0x26   : > { %622 = vmatpush3.msra.mxu0 %v263_v13  ;;  %669 = vmatpush3.msra.mxu1 %v263_v13 }
  0x27   : > { %623 = vmatprep.subr.mxu0 %v262_v14  ;;  %629 = vmatprep.mubr.f32.mxu0 %v252_v15 }
  0x28   : > { %624 = vmatpush3.msra.mxu0 %v262_v14  ;;  %654 = vmatprep.subr.mxu1 %v262_v14 }
  0x29   : > { %625 = vmatprep.subr.mxu0 %v261_v16  ;;  %670 = vmatpush3.msra.mxu1 %v262_v14 }
  0x2a   : > { %626 = vmatpush3.msra.mxu0 %v261_v16  ;;  %655 = vmatprep.subr.mxu1 %v261_v16 }
  0x2b   : > { %627 = vmatprep.subr.mxu0 %v260_v17  ;;  %671 = vmatpush3.msra.mxu1 %v261_v16 }
  0x2c   : > { %628 = vmatpush3.msra.mxu0 %v260_v17  ;;  %656 = vmatprep.subr.mxu1 %v260_v17 }
  0x2d   : > { %630 = vmatmul.mubr.f32.vlgmr.msra.gmra.mxu0 %v253_v18  ;;  %672 = vmatpush3.msra.mxu1 %v260_v17 }
  0x2e   : > { %632 = vmatprep.mubr.f32.mxu0 %v254_v19  ;;  %635 = vmatprep.mubr.f32.mxu1 %v256_v20 }
  0x2f   : > { %636 = vmatmul.mubr.f32.vlgmr.msra.gmra.mxu1 %v257_v21 }
  0x30   : > { %638 = vmatprep.mubr.f32.mxu1 %v258_v22 }
  0x31   : > { %633 = vmatmul.mubr.f32.gmra.mxu0 %v255_v23 }
  0x33   : > { %639 = vmatmul.mubr.f32.gmra.mxu1 %v259_v24 }
  0xed   : > { %v631_v26 = vpop.f32.mrf.mxu0 }
  0xee   : > { %v355_v27 = vadd.f32 %v631_v26, %v561_v25 }
  0xef   : > { %v349_v28 = vpop.f32.mrf.mxu0  ;;  %v637_v29 = vpop.f32.mrf.mxu1 }
  0xf0   : > { %563 = vst [vmem:[%s788_s6 + $0x10] sm:$0xff] %v355_v27  ;;  %v350_v30 = vadd.f32 %v561_v25, %v349_v28  ;;  %v375_v31 = vadd.f32 %v637_v29, %v561_v25  ;;  %v414_v39 = vmul.f32 %v355_v27, %v355_v27 }
  0xf1   : > { %v634_v32 = vpop.f32.mrf.mxu0  ;;  %v369_v33 = vpop.f32.mrf.mxu1 }
  0xf2   : > { %562 = vst [vmem:[%s788_s6 + $0x8] sm:$0xff] %v350_v30  ;;  %v413_v34 = vmul.f32 %v350_v30, %v350_v30  ;;  %v365_v35 = vadd.f32 %v634_v32, %v561_v25  ;;  %567 = vst [vmem:[%s788_s6 + $0x30] sm:$0xff] %v375_v31  ;;  %v370_v37 = vadd.f32 %v561_v25, %v369_v33 }
  0xf3   : > { %v359_v36 = vpop.f32.mrf.mxu0  ;;  %v640_v38 = vpop.f32.mrf.mxu1  ;;  %v400_v40 = vadd.f32 %v355_v27, %v350_v30  ;;  %v418_v54 = vmul.f32 %v375_v31, %v375_v31 }
  0xf4   : > { %565 = vst [vmem:[%s788_s6 + $0x20] sm:$0xff] %v365_v35  ;;  %v360_v41 = vadd.f32 %v561_v25, %v359_v36  ;;  %v385_v42 = vadd.f32 %v640_v38, %v561_v25  ;;  %566 = vst [vmem:[%s788_s6 + $0x28] sm:$0xff] %v370_v37  ;;  %v421_v44 = vadd.f32 %v414_v39, %v413_v34 }
  0xf5   : > { %v379_v43 = vpop.f32.mrf.mxu1  ;;  %v416_v48 = vmul.f32 %v365_v35, %v365_v35  ;;  %v417_v52 = vmul.f32 %v370_v37, %v370_v37 }
  0xf6   : > { %564 = vst [vmem:[%s788_s6 + $0x18] sm:$0xff] %v360_v41  ;;  %v401_v45 = vadd.f32 %v400_v40, %v360_v41  ;;  %v415_v46 = vmul.f32 %v360_v41, %v360_v41  ;;  %569 = vst [vmem:[%s788_s6 + $0x40] sm:$0xff] %v385_v42  ;;  %v380_v47 = vadd.f32 %v561_v25, %v379_v43 }
  0xf7   : > { %v420_v60 = vmul.f32 %v385_v42, %v385_v42 }
  0xf8   : > { %v422_v49 = vadd.f32 %v421_v44, %v415_v46  ;;  %v402_v50 = vadd.f32 %v401_v45, %v365_v35  ;;  %568 = vst [vmem:[%s788_s6 + $0x38] sm:$0xff] %v380_v47  ;;  %v419_v58 = vmul.f32 %v380_v47, %v380_v47  ;;  %s559_s6 = sshll.u32 %s873_s15, 1 }
  0xf9   : > { %s244_s20 = scalar_lea.vmem %s867_s4, %s559_s6 }
  0xfa   : > { %v403_v51 = vadd.f32 %v402_v50, %v370_v37  ;;  %v423_v53 = vadd.f32 %v422_v49, %v416_v48 }
  0xfc   : > { %v424_v55 = vadd.f32 %v423_v53, %v417_v52  ;;  %v404_v56 = vadd.f32 %v403_v51, %v375_v31 }
  0xfe   : > { %v405_v57 = vadd.f32 %v404_v56, %v380_v47  ;;  %v425_v59 = vadd.f32 %v424_v55, %v418_v54 }
 0x100   : > { %v406_v61 = vadd.f32 %v405_v57, %v385_v42  ;;  %v426_v62 = vadd.f32 %v425_v59, %v419_v58 }
 0x102   : > { %v407_v63 = vrot.slane %v406_v61, 4  ;;  %v427_v0 = vadd.f32 %v426_v62, %v420_v60 }
 0x104   : > { %v408_v1 = vadd.f32 %v407_v63, %v406_v61  ;;  %v428_v2 = vrot.slane %v427_v0, 4 }
 0x106   : > { %v409_v3 = vrot.slane %v408_v1, 2  ;;  %v429_v4 = vadd.f32 %v428_v2, %v427_v0 }
 0x108   : > { %v410_v5 = vadd.f32 %v409_v3, %v408_v1  ;;  %v430_v6 = vrot.slane %v429_v4, 2 }
 0x10a   : > { %v411_v7 = vrot.slane %v410_v5, 1  ;;  %v431_v8 = vadd.f32 %v430_v6, %v429_v4 }
 0x10c   : > { %v432_v9 = vrot.slane %v431_v8, 1  ;;  %v412_v10 = vadd.f32 %v411_v7, %v410_v5 }
 0x10e   : > { %v433_v11 = vadd.f32 %v432_v9, %v431_v8 }
 0x110   : > { %v435_v12 = vsel %vm434_vm0, %v412_v10, %v433_v11 }
 0x111   : > { %436 = vst [vmem:[%s244_s20] sm:$0x3] %v435_v12 }
 0x112 PF: > { %s15_s17 = sadd.s32 1, %s721_s17   ;;  %s868_s15 = smov %s717_s16 }
 0x113   : > { %p12_p5 = scmp.ge.s32.totalorder %s15_s17, 4   ;;  %s869_s16 = smov %s871_s18 }
 0x115   :  { %14 = sbr.rel (!%p12_p5) target bundleno = 2 (0x2), region = 80 }

// kernel: residual_block_forward.4
= control target key start
LH: loop header
LB: loop body
LE: loop exit
PB: predicated region body
PF: predicated region fallthrough
CT: control target
= control target key end

     0   :  { %s2774_s21 = smov 0   ;;  %s2776_s22 = smov 0   ;;  %s3538_s0 = inlined_call_operand.vmem [shape: f32[2,10,8,128], index: 0, kind: input, shape index: {}]   ;;  %s3539_s1 = inlined_call_operand.vmem [shape: f32[1,128], index: 1, kind: input, shape index: {}]   ;;  %s3540_s2 = inlined_call_operand.vmem [shape: f32[1,128], index: 2, kind: input, shape index: {}]   ;;  %s3541_s3 = inlined_call_operand.vmem [shape: f32[9,128,128], index: 3, kind: input, shape index: {}]   ;;  %s3542_s4 = inlined_call_operand.vmem [shape: f32[1,128], index: 4, kind: input, shape index: {}]   ;;  %s3543_s5 = inlined_call_operand.vmem [shape: f32[2,8,8,128], index: 5, kind: output, shape index: {0}]   ;;  %s3544_s6 = inlined_call_operand.vmem [shape: f32[2,1,2,128], index: 6, kind: output, shape index: {1}]  }
   0x1   :  { %s2778_s23 = smov 0  }
   0x2 LB: > { %s29_s24 = sadd.s32 1, %s2732_s22  ;;  %p1833_p0 = scmp.ge.s32.totalorder %s2736_s23, 1  ;;  %s2736_s23 = sphi %s2778_s23, %s17_s23   ;;  %s2732_s22 = sphi %s2776_s22, %s3562_s22   ;;  %s2728_s21 = sphi %s2774_s21, %s3561_s21  }
   0x3   : > { %p31_p1 = scmp.ge.s32.totalorder %s29_s24, 2  ;;  %p231_p2 = scmp.lt.s32.totalorder %s2736_s23, 3 }
   0x5   : > { %s3564_s24 = smov (%p31_p1, %s29_s24), 0  ;;  %p232_p3 = pnand %p1833_p0, %p231_p2 }
   0x7   : > { %235 = sbr.rel (%p232_p3) target bundleno = 437 (0x1b5), region = 40 }
   0xc   : > { %v1855_v0 = vld [vmem:[%s3541_s3 + $0xf8] sm:$0xff]  ;;  %v1854_v2 = vld [vmem:[%s3541_s3 + $0xf0] sm:$0xff]  ;;  %p272_p4 = scmp.lt.s32.totalorder %s2728_s21, 1  ;;  %v1853_v4 = vld [vmem:[%s3541_s3 + $0xe8] sm:$0xff]  ;;  %vm451_vm0 = vcmask 1040384   ;;  %v2738_v38 = vmov 0.0  }
   0xd   : > { %v508_v1 = vld [vmem:[%s3541_s3 + $0x78] sm:$0xff]  ;;  %2260 = vmatprep.subr.mxu0 %v1855_v0  ;;  %v507_v3 = vld [vmem:[%s3541_s3 + $0x70] sm:$0xff]  ;;  %v506_v5 = vld [vmem:[%s3541_s3 + $0x68] sm:$0xff]  ;;  %v2913_v39 = vrot.slane %v2738_v38, 7  ;;  %2292 = vmatprep.mubr.f32.mxu0 %v2738_v38  ;;  %vm482_vm2 = vcmask 1046528  }
   0xe   : > { %2304 = vmatprep.subr.mxu1 %v508_v1  ;;  %2261 = vmatpush3.msra.mxu0 %v1855_v0  ;;  %v1852_v6 = vld [vmem:[%s3541_s3 + $0xe0] sm:$0xff]  ;;  %s3566_s21 = smov (!%p272_p4, %s2728_s21), 1  ;;  %v1851_v8 = vld [vmem:[%s3541_s3 + $0xd8] sm:$0xff]  ;;  %v1850_v10 = vld [vmem:[%s3541_s3 + $0xd0] sm:$0xff] }
   0xf   : > { %2305 = vmatpush3.msra.mxu1 %v508_v1  ;;  %2262 = vmatprep.subr.mxu0 %v1854_v2  ;;  %v505_v7 = vld [vmem:[%s3541_s3 + $0x60] sm:$0xff]  ;;  %v504_v9 = vld [vmem:[%s3541_s3 + $0x58] sm:$0xff]  ;;  %v503_v11 = vld [vmem:[%s3541_s3 + $0x50] sm:$0xff]  ;;  %s2688_s29 = smul.u32 80, %s3566_s21  ;;  %s2043_s26 = sshll.u32 %s3566_s21, 6 }
  0x10   : > { %2306 = vmatprep.subr.mxu1 %v507_v3  ;;  %2263 = vmatpush3.msra.mxu0 %v1854_v2  ;;  %v1849_v12 = vld [vmem:[%s3541_s3 + $0xc8] sm:$0xff]  ;;  %v1848_v14 = vld [vmem:[%s3541_s3 + $0xc0] sm:$0xff]  ;;  %v1847_v16 = vld [vmem:[%s3541_s3 + $0xb8] sm:$0xff]  ;;  %s3512_s7 = scalar_lea.vmem %s3543_s5, %s2043_s26  ;;  %s1837_s8 = sshll.u32 %s3566_s21, 1 }
  0x11   : > { %2307 = vmatpush3.msra.mxu1 %v507_v3  ;;  %2264 = vmatprep.subr.mxu0 %v1853_v4  ;;  %v502_v13 = vld [vmem:[%s3541_s3 + $0x48] sm:$0xff]  ;;  %v501_v15 = vld [vmem:[%s3541_s3 + $0x40] sm:$0xff]  ;;  %s2847_s16 = scalar_lea.vmem %s3538_s0, %s2688_s29  ;;  %v500_v17 = vld [vmem:[%s3541_s3 + $0x38] sm:$0xff]  ;;  %s293_s11 = scalar_lea.vmem %s3544_s6, %s1837_s8 }
  0x12   : > { %2308 = vmatprep.subr.mxu1 %v506_v5  ;;  %2265 = vmatpush3.msra.mxu0 %v1853_v4  ;;  %v298_v18 = vld [vmem:[%s2847_s16 + $0x8] sm:$0xff]  ;;  %v2859_v19 = vld [vmem:[%s3539_s1] ss:$0 sm:$0xff]  ;;  %v1846_v20 = vld [vmem:[%s3541_s3 + $0xb0] sm:$0xff] }
  0x13   : > { %2309 = vmatpush3.msra.mxu1 %v506_v5  ;;  %2266 = vmatprep.subr.mxu0 %v1852_v6  ;;  %v499_v21 = vld [vmem:[%s3541_s3 + $0x30] sm:$0xff]  ;;  %v1845_v22 = vld [vmem:[%s3541_s3 + $0xa8] sm:$0xff]  ;;  %v315_v24 = vmul.f32 %v2859_v19, %v298_v18  ;;  %v2877_v25 = vld [vmem:[%s3540_s2] ss:$0 sm:$0xff] }
  0x14   : > { %2310 = vmatprep.subr.mxu1 %v505_v7  ;;  %2267 = vmatpush3.msra.mxu0 %v1852_v6  ;;  %v498_v23 = vld [vmem:[%s3541_s3 + $0x28] sm:$0xff]  ;;  %v1844_v26 = vld [vmem:[%s3541_s3 + $0xa0] sm:$0xff]  ;;  %v1843_v28 = vld [vmem:[%s3541_s3 + $0x98] sm:$0xff] }
  0x15   : > { %2311 = vmatpush3.msra.mxu1 %v505_v7  ;;  %2268 = vmatprep.subr.mxu0 %v1851_v8  ;;  %v497_v27 = vld [vmem:[%s3541_s3 + $0x20] sm:$0xff]  ;;  %v496_v29 = vld [vmem:[%s3541_s3 + $0x18] sm:$0xff]  ;;  %v332_v30 = vadd.f32 %v2877_v25, %v315_v24  ;;  %v1842_v31 = vld [vmem:[%s3541_s3 + $0x90] sm:$0xff] }
  0x16   : > { %2312 = vmatprep.subr.mxu1 %v504_v9  ;;  %2269 = vmatpush3.msra.mxu0 %v1851_v8  ;;  %v495_v32 = vld [vmem:[%s3541_s3 + $0x10] sm:$0xff]  ;;  %v1841_v33 = vld [vmem:[%s3541_s3 + $0x88] sm:$0xff]  ;;  %v1840_v36 = vld [vmem:[%s3541_s3 + $0x80] sm:$0xff] }
  0x17   : > { %2313 = vmatpush3.msra.mxu1 %v504_v9  ;;  %2270 = vmatprep.subr.mxu0 %v1850_v10  ;;  %v494_v34 = vld [vmem:[%s3541_s3 + $0x8] sm:$0xff]  ;;  %v2904_v35 = vmax.f32 %v332_v30, 0.0  ;;  %v493_v37 = vld [vmem:[%s3541_s3] sm:$0xff]  ;;  %vm2916_vm1 = vmneg %vm451_vm0 }
  0x18   : > { %2314 = vmatprep.subr.mxu1 %v503_v11  ;;  %2271 = vmatpush3.msra.mxu0 %v1850_v10  ;;  %v1887_v42 = vld [vmem:[%s3541_s3 + $0x178] sm:$0xff]  ;;  %v1886_v44 = vld [vmem:[%s3541_s3 + $0x170] sm:$0xff]  ;;  %v1885_v47 = vld [vmem:[%s3541_s3 + $0x168] sm:$0xff] }
  0x19   : > { %2315 = vmatpush3.msra.mxu1 %v503_v11  ;;  %2272 = vmatprep.subr.mxu0 %v1849_v12  ;;  %v432_v41 = vrot.slane %v2904_v35, 7  ;;  %v1911_v43 = vld [vmem:[%s3541_s3 + $0x1f8] sm:$0xff]  ;;  %v1910_v45 = vld [vmem:[%s3541_s3 + $0x1f0] sm:$0xff]  ;;  %v1909_v48 = vld [vmem:[%s3541_s3 + $0x1e8] sm:$0xff] }
  0x1a   : > { %2316 = vmatprep.subr.mxu1 %v502_v13  ;;  %2273 = vmatpush3.msra.mxu0 %v1849_v12  ;;  %v299_v46 = vld [vmem:[%s2847_s16 + $0x10] sm:$0xff]  ;;  %v300_v49 = vld [vmem:[%s2847_s16 + $0x18] sm:$0xff]  ;;  %v1884_v51 = vld [vmem:[%s3541_s3 + $0x160] sm:$0xff] }
  0x1b   : > { %2317 = vmatpush3.msra.mxu1 %v502_v13  ;;  %2274 = vmatprep.subr.mxu0 %v1848_v14  ;;  %v316_v50 = vmul.f32 %v2859_v19, %v299_v46  ;;  %v1908_v52 = vld [vmem:[%s3541_s3 + $0x1e0] sm:$0xff]  ;;  %v317_v53 = vmul.f32 %v2859_v19, %v300_v49  ;;  %v1883_v54 = vld [vmem:[%s3541_s3 + $0x158] sm:$0xff]  ;;  %v1882_v58 = vld [vmem:[%s3541_s3 + $0x150] sm:$0xff] }
  0x1c   : > { %2318 = vmatprep.subr.mxu1 %v501_v15  ;;  %2275 = vmatpush3.msra.mxu0 %v1848_v14  ;;  %v1907_v55 = vld [vmem:[%s3541_s3 + $0x1d8] sm:$0xff]  ;;  %v301_v56 = vld [vmem:[%s2847_s16 + $0x20] sm:$0xff]  ;;  %v1906_v59 = vld [vmem:[%s3541_s3 + $0x1d0] sm:$0xff] }
  0x1d   : > { %2319 = vmatpush3.msra.mxu1 %v501_v15  ;;  %2276 = vmatprep.subr.mxu0 %v1847_v16  ;;  %v333_v57 = vadd.f32 %v2877_v25, %v316_v50  ;;  %v302_v60 = vld [vmem:[%s2847_s16 + $0x28] sm:$0xff]  ;;  %v334_v61 = vadd.f32 %v2877_v25, %v317_v53  ;;  %v318_v62 = vmul.f32 %v2859_v19, %v301_v56  ;;  %v1880_v3 = vld [vmem:[%s3541_s3 + $0x140] sm:$0xff]  ;;  %v303_v5 = vld [vmem:[%s2847_s16 + $0x30] sm:$0xff] }
  0x1e   : > { %2320 = vmatprep.subr.mxu1 %v500_v17  ;;  %2277 = vmatpush3.msra.mxu0 %v1847_v16  ;;  %v1881_v63 = vld [vmem:[%s3541_s3 + $0x148] sm:$0xff]  ;;  %v319_v2 = vmul.f32 %v2859_v19, %v302_v60  ;;  %v1904_v4 = vld [vmem:[%s3541_s3 + $0x1c0] sm:$0xff]  ;;  %v1879_v8 = vld [vmem:[%s3541_s3 + $0x138] sm:$0xff]  ;;  %v320_v13 = vmul.f32 %v2859_v19, %v303_v5 }
  0x1f   : > { %2321 = vmatpush3.msra.mxu1 %v500_v17  ;;  %2278 = vmatprep.subr.mxu0 %v1846_v20  ;;  %v1905_v0 = vld [vmem:[%s3541_s3 + $0x1c8] sm:$0xff]  ;;  %v2981_v1 = vmax.f32 %v333_v57, 0.0  ;;  %v2991_v6 = vmax.f32 %v334_v61, 0.0  ;;  %v335_v7 = vadd.f32 %v2877_v25, %v318_v62  ;;  %v1903_v9 = vld [vmem:[%s3541_s3 + $0x1b8] sm:$0xff]  ;;  %v1878_v14 = vld [vmem:[%s3541_s3 + $0x130] sm:$0xff] }
  0x20   : > { %2322 = vmatprep.subr.mxu1 %v499_v21  ;;  %2279 = vmatpush3.msra.mxu0 %v1846_v20  ;;  %v304_v10 = vld [vmem:[%s2847_s16 + $0x38] sm:$0xff]  ;;  %v336_v12 = vadd.f32 %v2877_v25, %v319_v2  ;;  %v1902_v15 = vld [vmem:[%s3541_s3 + $0x1b0] sm:$0xff]  ;;  %v1896_v46 = vld [vmem:[%s3541_s3 + $0x180] sm:$0xff] }
  0x21   : > { %2323 = vmatpush3.msra.mxu1 %v499_v21  ;;  %2280 = vmatprep.subr.mxu0 %v1845_v22  ;;  %v3002_v11 = vrot.slane %v2981_v1, 7  ;;  %v3013_v16 = vrot.slane %v2991_v6, 7  ;;  %v3015_v17 = vmax.f32 %v335_v7, 0.0  ;;  %v321_v18 = vmul.f32 %v2859_v19, %v304_v10  ;;  %v1943_v49 = vld [vmem:[%s3541_s3 + $0x278] sm:$0xff]  ;;  %v1957_v56 = vld [vmem:[%s3541_s3 + $0x2e8] sm:$0xff]  ;;  %v1940_v57 = vld [vmem:[%s3541_s3 + $0x260] sm:$0xff] }
  0x22   : > { %2324 = vmatprep.subr.mxu1 %v498_v23  ;;  %2281 = vmatpush3.msra.mxu0 %v1845_v22  ;;  %v3022_v20 = vmax.f32 %v336_v12, 0.0  ;;  %v337_v21 = vadd.f32 %v2877_v25, %v320_v13  ;;  %v1877_v22 = vld [vmem:[%s3541_s3 + $0x128] sm:$0xff]  ;;  %v1959_v50 = vld [vmem:[%s3541_s3 + $0x2f8] sm:$0xff]  ;;  %v3124_v53 = vrot.slane %v2981_v1, 1  ;;  %v1954_v2 = vld [vmem:[%s3541_s3 + $0x2d0] sm:$0xff] }
  0x23   : > { %2325 = vmatpush3.msra.mxu1 %v498_v23  ;;  %2282 = vmatprep.subr.mxu0 %v1844_v26  ;;  %v1901_v23 = vld [vmem:[%s3541_s3 + $0x1a8] sm:$0xff]  ;;  %v3036_v24 = vrot.slane %v3015_v17, 7  ;;  %v3151_v60 = vrot.slane %v3015_v17, 1  ;;  %v1955_v62 = vld [vmem:[%s3541_s3 + $0x2d8] sm:$0xff]  ;;  %v1952_v10 = vld [vmem:[%s3541_s3 + $0x2c0] sm:$0xff] }
  0x24   : > { %2326 = vmatprep.subr.mxu1 %v497_v27  ;;  %2283 = vmatpush3.msra.mxu0 %v1844_v26  ;;  %v338_v26 = vadd.f32 %v2877_v25, %v321_v18  ;;  %v3048_v30 = vmax.f32 %v337_v21, 0.0  ;;  %v3157_v61 = vrot.slane %v3022_v20, 1  ;;  %v1937_v5 = vld [vmem:[%s3541_s3 + $0x248] sm:$0xff]  ;;  %v1935_v12 = vld [vmem:[%s3541_s3 + $0x238] sm:$0xff] }
  0x25   : > { %2327 = vmatpush3.msra.mxu1 %v497_v27  ;;  %2284 = vmatprep.subr.mxu0 %v1843_v28  ;;  %v1876_v27 = vld [vmem:[%s3541_s3 + $0x120] sm:$0xff]  ;;  %v1953_v7 = vld [vmem:[%s3541_s3 + $0x2c8] sm:$0xff]  ;;  %v1951_v13 = vld [vmem:[%s3541_s3 + $0x2b8] sm:$0xff] }
  0x26   : > { %2328 = vmatprep.subr.mxu1 %v496_v29  ;;  %2285 = vmatpush3.msra.mxu0 %v1843_v28  ;;  %v1900_v28 = vld [vmem:[%s3541_s3 + $0x1a0] sm:$0xff]  ;;  %v1933_v18 = vld [vmem:[%s3541_s3 + $0x228] sm:$0xff] }
  0x27   : > { %2329 = vmatpush3.msra.mxu1 %v496_v29  ;;  %2286 = vmatprep.subr.mxu0 %v1842_v31  ;;  %v3046_v29 = vrot.slane %v3022_v20, 7  ;;  %v1949_v21 = vld [vmem:[%s3541_s3 + $0x2a8] sm:$0xff] }
  0x28   : > { %2330 = vmatprep.subr.mxu1 %v495_v32  ;;  %2287 = vmatpush3.msra.mxu0 %v1842_v31  ;;  %v3054_v31 = vmax.f32 %v338_v26, 0.0  ;;  %v1931_v26 = vld [vmem:[%s3541_s3 + $0x218] sm:$0xff]  ;;  %v2021_v40 = vld [vmem:[%s3541_s3 + $0x428] sm:$0xff] }
  0x29   : > { %2331 = vmatpush3.msra.mxu1 %v495_v32  ;;  %2288 = vmatprep.subr.mxu0 %v1841_v33  ;;  %v1875_v32 = vld [vmem:[%s3541_s3 + $0x118] sm:$0xff] }
  0x2a   : > { %2332 = vmatprep.subr.mxu1 %v494_v34  ;;  %2289 = vmatpush3.msra.mxu0 %v1841_v33  ;;  %v1899_v33 = vld [vmem:[%s3541_s3 + $0x198] sm:$0xff] }
  0x2b   : > { %2333 = vmatpush3.msra.mxu1 %v494_v34  ;;  %2290 = vmatprep.subr.mxu0 %v1840_v36  ;;  %v3067_v34 = vrot.slane %v3048_v30, 7 }
  0x2c   : > { %2334 = vmatprep.subr.mxu1 %v493_v37  ;;  %2291 = vmatpush3.msra.mxu0 %v1840_v36  ;;  %v1874_v36 = vld [vmem:[%s3541_s3 + $0x110] sm:$0xff] }
  0x2d   : > { %2335 = vmatpush3.msra.mxu1 %v493_v37  ;;  %2336 = vmatprep.mubr.msk.f32.mxu1 %vm2916_vm1, %v2913_v39  ;;  %v1898_v37 = vld [vmem:[%s3541_s3 + $0x190] sm:$0xff] }
  0x2e   : > { %2293 = vmatmul.mubr.f32.vlgmr.msra.gmra.mxu0 %v2904_v35  ;;  %2337 = vmatmul.mubr.msk.f32.vlgmr.msra.gmra.mxu1 %vm2916_vm1, %v432_v41 }
  0x2f   : > { %2348 = vmatprep.subr.mxu0 %v1887_v42  ;;  %2392 = vmatprep.subr.mxu1 %v1911_v43 }
  0x30   : > { %2349 = vmatpush3.msra.mxu0 %v1887_v42  ;;  %2393 = vmatpush3.msra.mxu1 %v1911_v43  ;;  %v3076_v42 = vrot.slane %v3054_v31, 7  ;;  %v1873_v43 = vld [vmem:[%s3541_s3 + $0x108] sm:$0xff] }
  0x31   : > { %2350 = vmatprep.subr.mxu0 %v1886_v44  ;;  %2394 = vmatprep.subr.mxu1 %v1910_v45 }
  0x32   : > { %2351 = vmatpush3.msra.mxu0 %v1886_v44  ;;  %2395 = vmatpush3.msra.mxu1 %v1910_v45  ;;  %v1897_v44 = vld [vmem:[%s3541_s3 + $0x188] sm:$0xff]  ;;  %v1872_v45 = vld [vmem:[%s3541_s3 + $0x100] sm:$0xff] }
  0x33   : > { %2352 = vmatprep.subr.mxu0 %v1885_v47  ;;  %2396 = vmatprep.subr.mxu1 %v1909_v48 }
  0x34   : > { %2353 = vmatpush3.msra.mxu0 %v1885_v47  ;;  %2397 = vmatpush3.msra.mxu1 %v1909_v48  ;;  %v3099_v47 = vrot.slane %v2738_v38, 1  ;;  %v463_v48 = vrot.slane %v2904_v35, 1 }
  0x35   : > { %2354 = vmatprep.subr.mxu0 %v1884_v51  ;;  %2398 = vmatprep.subr.mxu1 %v1908_v52 }
  0x36   : > { %2355 = vmatpush3.msra.mxu0 %v1884_v51  ;;  %2399 = vmatpush3.msra.mxu1 %v1908_v52  ;;  %v1942_v51 = vld [vmem:[%s3541_s3 + $0x270] sm:$0xff] }
  0x37   : > { %2356 = vmatprep.subr.mxu0 %v1883_v54  ;;  %2400 = vmatprep.subr.mxu1 %v1907_v55  ;;  %v1958_v52 = vld [vmem:[%s3541_s3 + $0x2f0] sm:$0xff] }
  0x38   : > { %2357 = vmatpush3.msra.mxu0 %v1883_v54  ;;  %2401 = vmatpush3.msra.mxu1 %v1907_v55  ;;  %v3130_v54 = vrot.slane %v2991_v6, 1  ;;  %v1941_v55 = vld [vmem:[%s3541_s3 + $0x268] sm:$0xff] }
  0x39   : > { %2358 = vmatprep.subr.mxu0 %v1882_v58  ;;  %2402 = vmatprep.subr.mxu1 %v1906_v59 }
  0x3a   : > { %2359 = vmatpush3.msra.mxu0 %v1882_v58  ;;  %2403 = vmatpush3.msra.mxu1 %v1906_v59  ;;  %v1956_v59 = vld [vmem:[%s3541_s3 + $0x2e0] sm:$0xff] }
  0x3b   : > { %2360 = vmatprep.subr.mxu0 %v1881_v63  ;;  %2404 = vmatprep.subr.mxu1 %v1905_v0 }
  0x3c   : > { %2361 = vmatpush3.msra.mxu0 %v1881_v63  ;;  %2405 = vmatpush3.msra.mxu1 %v1905_v0  ;;  %v1938_v0 = vld [vmem:[%s3541_s3 + $0x250] sm:$0xff] }
  0x3d   : > { %2362 = vmatprep.subr.mxu0 %v1880_v3  ;;  %2406 = vmatprep.subr.mxu1 %v1904_v4 }
  0x3e   : > { %2363 = vmatpush3.msra.mxu0 %v1880_v3  ;;  %2407 = vmatpush3.msra.mxu1 %v1904_v4  ;;  %v3186_v3 = vrot.slane %v3054_v31, 1 }
  0x3f   : > { %2364 = vmatprep.subr.mxu0 %v1879_v8  ;;  %2408 = vmatprep.subr.mxu1 %v1903_v9 }
  0x40   : > { %2365 = vmatpush3.msra.mxu0 %v1879_v8  ;;  %2409 = vmatpush3.msra.mxu1 %v1903_v9  ;;  %v1936_v9 = vld [vmem:[%s3541_s3 + $0x240] sm:$0xff] }
  0x41   : > { %2295 = vmatprep.mubr.f32.mxu0 %v2981_v1  ;;  %2339 = vmatprep.mubr.msk.f32.mxu1 %vm2916_vm1, %v3002_v11 }
  0x42   : > { %2366 = vmatprep.subr.mxu0 %v1878_v14  ;;  %2410 = vmatprep.subr.mxu1 %v1902_v15 }
  0x43   : > { %2296 = vmatmul.mubr.f32.gmra.mxu0 %v2991_v6  ;;  %2340 = vmatmul.mubr.msk.f32.gmra.mxu1 %vm2916_vm1, %v3013_v16 }
  0x44   : > { %2367 = vmatpush3.msra.mxu0 %v1878_v14  ;;  %2411 = vmatpush3.msra.mxu1 %v1902_v15  ;;  %v1934_v14 = vld [vmem:[%s3541_s3 + $0x230] sm:$0xff] }
  0x45   : > { %2368 = vmatprep.subr.mxu0 %v1877_v22  ;;  %2412 = vmatprep.subr.mxu1 %v1901_v23  ;;  %v1950_v15 = vld [vmem:[%s3541_s3 + $0x2b0] sm:$0xff] }
  0x46   : > { %2369 = vmatpush3.msra.mxu0 %v1877_v22  ;;  %2413 = vmatpush3.msra.mxu1 %v1901_v23  ;;  %v1932_v22 = vld [vmem:[%s3541_s3 + $0x220] sm:$0xff] }
  0x47   : > { %2298 = vmatprep.mubr.f32.mxu0 %v3015_v17  ;;  %2342 = vmatprep.mubr.msk.f32.mxu1 %vm2916_vm1, %v3036_v24  ;;  %v1948_v23 = vld [vmem:[%s3541_s3 + $0x2a0] sm:$0xff] }
  0x48   : > { %2370 = vmatprep.subr.mxu0 %v1876_v27  ;;  %2414 = vmatprep.subr.mxu1 %v1900_v28 }
  0x49   : > { %2299 = vmatmul.mubr.f32.gmra.mxu0 %v3022_v20  ;;  %2343 = vmatmul.mubr.msk.f32.gmra.mxu1 %vm2916_vm1, %v3046_v29 }
  0x4a   : > { %2371 = vmatpush3.msra.mxu0 %v1876_v27  ;;  %2415 = vmatpush3.msra.mxu1 %v1900_v28  ;;  %v1947_v27 = vld [vmem:[%s3541_s3 + $0x298] sm:$0xff]  ;;  %v1930_v28 = vld [vmem:[%s3541_s3 + $0x210] sm:$0xff] }
  0x4b   : > { %2372 = vmatprep.subr.mxu0 %v1875_v32  ;;  %2416 = vmatprep.subr.mxu1 %v1899_v33 }
  0x4c   : > { %2373 = vmatpush3.msra.mxu0 %v1875_v32  ;;  %2417 = vmatpush3.msra.mxu1 %v1899_v33  ;;  %v1946_v32 = vld [vmem:[%s3541_s3 + $0x290] sm:$0xff]  ;;  %v1929_v33 = vld [vmem:[%s3541_s3 + $0x208] sm:$0xff] }
  0x4d   : > { %2301 = vmatprep.mubr.f32.mxu0 %v3048_v30  ;;  %2345 = vmatprep.mubr.msk.f32.mxu1 %vm2916_vm1, %v3067_v34 }
  0x4e   : > { %2374 = vmatprep.subr.mxu0 %v1874_v36  ;;  %2418 = vmatprep.subr.mxu1 %v1898_v37 }
  0x4f   : > { %2302 = vmatmul.mubr.f32.gmra.mxu0 %v3054_v31  ;;  %2346 = vmatmul.mubr.msk.f32.gmra.mxu1 %vm2916_vm1, %v3076_v42 }
  0x50   : > { %2375 = vmatpush3.msra.mxu0 %v1874_v36  ;;  %2419 = vmatpush3.msra.mxu1 %v1898_v37  ;;  %v1945_v36 = vld [vmem:[%s3541_s3 + $0x288] sm:$0xff]  ;;  %v1928_v37 = vld [vmem:[%s3541_s3 + $0x200] sm:$0xff] }
  0x51   : > { %2376 = vmatprep.subr.mxu0 %v1873_v43  ;;  %2420 = vmatprep.subr.mxu1 %v1897_v44 }
  0x52   : > { %2377 = vmatpush3.msra.mxu0 %v1873_v43  ;;  %2421 = vmatpush3.msra.mxu1 %v1897_v44  ;;  %v1944_v43 = vld [vmem:[%s3541_s3 + $0x280] sm:$0xff]  ;;  %v1983_v44 = vld [vmem:[%s3541_s3 + $0x378] sm:$0xff] }
  0x53   : > { %2378 = vmatprep.subr.mxu0 %v1872_v45  ;;  %2422 = vmatprep.subr.mxu1 %v1896_v46 }
  0x54   : > { %2379 = vmatpush3.msra.mxu0 %v1872_v45  ;;  %2380 = vmatprep.mubr.msk.f32.mxu0 %vm482_vm2, %v3099_v47  ;;  %v2015_v45 = vld [vmem:[%s3541_s3 + $0x3f8] sm:$0xff] }
  0x55   : > { %2423 = vmatpush3.msra.mxu1 %v1896_v46  ;;  %2381 = vmatmul.mubr.msk.f32.vlgmr.msra.gmra.mxu0 %vm482_vm2, %v463_v48  ;;  %v1982_v46 = vld [vmem:[%s3541_s3 + $0x370] sm:$0xff] }
  0x56   : > { %2424 = vmatprep.mubr.msk.f32.mxu1 %vm2916_vm1, %v432_v41  ;;  %2436 = vmatprep.subr.mxu0 %v1943_v49  ;;  %v305_v41 = vld [vmem:[%s2847_s16 + $0x40] sm:$0xff] }
  0x57   : > { %2480 = vmatprep.subr.mxu1 %v1959_v50  ;;  %2425 = vmatmul.mubr.msk.f32.vlgmr.msra.gmra.mxu1 %vm2916_vm1, %v3002_v11  ;;  %v322_v58 = vmul.f32 %v2859_v19, %v305_v41  ;;  %v1939_v19 = vld [vmem:[%s3541_s3 + $0x258] sm:$0xff] }
  0x58   : > { %2437 = vmatpush3.msra.mxu0 %v1943_v49  ;;  %2481 = vmatpush3.msra.mxu1 %v1959_v50  ;;  %v2014_v49 = vld [vmem:[%s3541_s3 + $0x3f0] sm:$0xff]  ;;  %v1980_v50 = vld [vmem:[%s3541_s3 + $0x360] sm:$0xff]  ;;  %v2011_v41 = vld [vmem:[%s3541_s3 + $0x3d8] sm:$0xff] }
  0x59   : > { %2438 = vmatprep.subr.mxu0 %v1942_v51  ;;  %2482 = vmatprep.subr.mxu1 %v1958_v52  ;;  %v339_v63 = vadd.f32 %v2877_v25, %v322_v58  ;;  %v3180_v25 = vrot.slane %v3048_v30, 1  ;;  %v2009_v58 = vld [vmem:[%s3541_s3 + $0x3c8] sm:$0xff] }
  0x5a   : > { %2383 = vmatprep.mubr.msk.f32.mxu0 %vm482_vm2, %v3124_v53  ;;  %2439 = vmatpush3.msra.mxu0 %v1942_v51  ;;  %v2012_v51 = vld [vmem:[%s3541_s3 + $0x3e0] sm:$0xff] }
  0x5b   : > { %2483 = vmatpush3.msra.mxu1 %v1958_v52  ;;  %2384 = vmatmul.mubr.msk.f32.gmra.mxu0 %vm482_vm2, %v3130_v54  ;;  %v3188_v4 = vmax.f32 %v339_v63, 0.0  ;;  %v1979_v52 = vld [vmem:[%s3541_s3 + $0x358] sm:$0xff] }
  0x5c   : > { %2440 = vmatprep.subr.mxu0 %v1941_v55  ;;  %2484 = vmatprep.subr.mxu1 %v1957_v56  ;;  %v1975_v63 = vld [vmem:[%s3541_s3 + $0x338] sm:$0xff] }
  0x5d   : > { %2427 = vmatprep.mubr.msk.f32.mxu1 %vm2916_vm1, %v3013_v16  ;;  %2441 = vmatpush3.msra.mxu0 %v1941_v55  ;;  %v439_v8 = vrot.slane %v3188_v4, 7  ;;  %v1978_v55 = vld [vmem:[%s3541_s3 + $0x350] sm:$0xff] }
  0x5e   : > { %2485 = vmatpush3.msra.mxu1 %v1957_v56  ;;  %2442 = vmatprep.subr.mxu0 %v1940_v57  ;;  %v2010_v56 = vld [vmem:[%s3541_s3 + $0x3d0] sm:$0xff] }
  0x5f   : > { %2428 = vmatmul.mubr.msk.f32.gmra.mxu1 %vm2916_vm1, %v3036_v24  ;;  %2486 = vmatprep.subr.mxu1 %v1956_v59 }
  0x60   : > { %2386 = vmatprep.mubr.msk.f32.mxu0 %vm482_vm2, %v3151_v60  ;;  %2443 = vmatpush3.msra.mxu0 %v1940_v57  ;;  %v1977_v57 = vld [vmem:[%s3541_s3 + $0x348] sm:$0xff] }
  0x61   : > { %2487 = vmatpush3.msra.mxu1 %v1956_v59  ;;  %2387 = vmatmul.mubr.msk.f32.gmra.mxu0 %vm482_vm2, %v3157_v61  ;;  %v470_v59 = vrot.slane %v3188_v4, 1 }
  0x62   : > { %2444 = vmatprep.subr.mxu0 %v1939_v19  ;;  %2488 = vmatprep.subr.mxu1 %v1955_v62 }
  0x63   : > { %2430 = vmatprep.mubr.msk.f32.mxu1 %vm2916_vm1, %v3046_v29  ;;  %2445 = vmatpush3.msra.mxu0 %v1939_v19  ;;  %v1976_v19 = vld [vmem:[%s3541_s3 + $0x340] sm:$0xff] }
  0x64   : > { %2489 = vmatpush3.msra.mxu1 %v1955_v62  ;;  %2446 = vmatprep.subr.mxu0 %v1938_v0  ;;  %v2008_v62 = vld [vmem:[%s3541_s3 + $0x3c0] sm:$0xff] }
  0x65   : > { %2431 = vmatmul.mubr.msk.f32.gmra.mxu1 %vm2916_vm1, %v3067_v34  ;;  %2490 = vmatprep.subr.mxu1 %v1954_v2 }
  0x66   : > { %2389 = vmatprep.mubr.msk.f32.mxu0 %vm482_vm2, %v3180_v25  ;;  %2447 = vmatpush3.msra.mxu0 %v1938_v0  ;;  %v2007_v0 = vld [vmem:[%s3541_s3 + $0x3b8] sm:$0xff] }
  0x67   : > { %2491 = vmatpush3.msra.mxu1 %v1954_v2  ;;  %2390 = vmatmul.mubr.msk.f32.gmra.mxu0 %vm482_vm2, %v3186_v3  ;;  %v1974_v2 = vld [vmem:[%s3541_s3 + $0x330] sm:$0xff] }
  0x68   : > { %2448 = vmatprep.subr.mxu0 %v1937_v5  ;;  %2492 = vmatprep.subr.mxu1 %v1953_v7 }
  0x69   : > { %2433 = vmatprep.mubr.msk.f32.mxu1 %vm2916_vm1, %v3076_v42  ;;  %2449 = vmatpush3.msra.mxu0 %v1937_v5  ;;  %v2006_v5 = vld [vmem:[%s3541_s3 + $0x3b0] sm:$0xff] }
  0x6a   : > { %2493 = vmatpush3.msra.mxu1 %v1953_v7  ;;  %2450 = vmatprep.subr.mxu0 %v1936_v9  ;;  %v1973_v7 = vld [vmem:[%s3541_s3 + $0x328] sm:$0xff] }
  0x6b   : > { %2434 = vmatmul.mubr.msk.f32.gmra.mxu1 %vm2916_vm1, %v439_v8  ;;  %2494 = vmatprep.subr.mxu1 %v1952_v10 }
  0x6c   : > { %2451 = vmatpush3.msra.mxu0 %v1936_v9  ;;  %2495 = vmatpush3.msra.mxu1 %v1952_v10  ;;  %v2005_v9 = vld [vmem:[%s3541_s3 + $0x3a8] sm:$0xff]  ;;  %v1972_v10 = vld [vmem:[%s3541_s3 + $0x320] sm:$0xff] }
  0x6d   : > { %2452 = vmatprep.subr.mxu0 %v1935_v12  ;;  %2496 = vmatprep.subr.mxu1 %v1951_v13 }
  0x6e   : > { %2453 = vmatpush3.msra.mxu0 %v1935_v12  ;;  %2497 = vmatpush3.msra.mxu1 %v1951_v13  ;;  %v2004_v12 = vld [vmem:[%s3541_s3 + $0x3a0] sm:$0xff]  ;;  %v1971_v13 = vld [vmem:[%s3541_s3 + $0x318] sm:$0xff] }
  0x6f   : > { %2454 = vmatprep.subr.mxu0 %v1934_v14  ;;  %2498 = vmatprep.subr.mxu1 %v1950_v15 }
  0x70   : > { %2455 = vmatpush3.msra.mxu0 %v1934_v14  ;;  %2499 = vmatpush3.msra.mxu1 %v1950_v15  ;;  %v2003_v14 = vld [vmem:[%s3541_s3 + $0x398] sm:$0xff]  ;;  %v1970_v15 = vld [vmem:[%s3541_s3 + $0x310] sm:$0xff] }
  0x71   : > { %2456 = vmatprep.subr.mxu0 %v1933_v18  ;;  %2500 = vmatprep.subr.mxu1 %v1949_v21 }
  0x72   : > { %2457 = vmatpush3.msra.mxu0 %v1933_v18  ;;  %2501 = vmatpush3.msra.mxu1 %v1949_v21  ;;  %v2002_v18 = vld [vmem:[%s3541_s3 + $0x390] sm:$0xff]  ;;  %v1969_v21 = vld [vmem:[%s3541_s3 + $0x308] sm:$0xff] }
  0x73   : > { %2458 = vmatprep.subr.mxu0 %v1932_v22  ;;  %2502 = vmatprep.subr.mxu1 %v1948_v23 }
  0x74   : > { %2459 = vmatpush3.msra.mxu0 %v1932_v22  ;;  %2503 = vmatpush3.msra.mxu1 %v1948_v23  ;;  %v2001_v22 = vld [vmem:[%s3541_s3 + $0x388] sm:$0xff]  ;;  %v1968_v23 = vld [vmem:[%s3541_s3 + $0x300] sm:$0xff] }
  0x75   : > { %2460 = vmatprep.subr.mxu0 %v1931_v26  ;;  %2504 = vmatprep.subr.mxu1 %v1947_v27 }
  0x76   : > { %2461 = vmatpush3.msra.mxu0 %v1931_v26  ;;  %2505 = vmatpush3.msra.mxu1 %v1947_v27  ;;  %v2000_v26 = vld [vmem:[%s3541_s3 + $0x380] sm:$0xff]  ;;  %v2031_v27 = vld [vmem:[%s3541_s3 + $0x478] sm:$0xff] }
  0x77   : > { %2462 = vmatprep.subr.mxu0 %v1930_v28  ;;  %2506 = vmatprep.subr.mxu1 %v1946_v32 }
  0x78   : > { %2463 = vmatpush3.msra.mxu0 %v1930_v28  ;;  %2507 = vmatpush3.msra.mxu1 %v1946_v32  ;;  %v2030_v28 = vld [vmem:[%s3541_s3 + $0x470] sm:$0xff] }
  0x79   : > { %2464 = vmatprep.subr.mxu0 %v1929_v33  ;;  %2508 = vmatprep.subr.mxu1 %v1945_v36 }
  0x7a   : > { %2465 = vmatpush3.msra.mxu0 %v1929_v33  ;;  %2509 = vmatpush3.msra.mxu1 %v1945_v36 }
  0x7b   : > { %2466 = vmatprep.subr.mxu0 %v1928_v37  ;;  %2510 = vmatprep.subr.mxu1 %v1944_v43 }
  0x7c   : > { %2467 = vmatpush3.msra.mxu0 %v1928_v37  ;;  %2468 = vmatprep.mubr.f32.mxu0 %v2904_v35  ;;  %v1981_v35 = vld [vmem:[%s3541_s3 + $0x368] sm:$0xff] }
  0x7d   : > { %2511 = vmatpush3.msra.mxu1 %v1944_v43  ;;  %2469 = vmatmul.mubr.f32.vlgmr.msra.gmra.mxu0 %v2981_v1 }
  0x7e   : > { %2512 = vmatprep.mubr.msk.f32.mxu1 %vm482_vm2, %v463_v48  ;;  %2524 = vmatprep.subr.mxu0 %v1983_v44  ;;  %v2013_v48 = vld [vmem:[%s3541_s3 + $0x3e8] sm:$0xff] }
  0x7f   : > { %2568 = vmatprep.subr.mxu1 %v2015_v45  ;;  %2513 = vmatmul.mubr.msk.f32.vlgmr.msra.gmra.mxu1 %vm482_vm2, %v3124_v53 }
  0x80   : > { %2525 = vmatpush3.msra.mxu0 %v1983_v44  ;;  %2569 = vmatpush3.msra.mxu1 %v2015_v45 }
  0x81   : > { %2526 = vmatprep.subr.mxu0 %v1982_v46  ;;  %2570 = vmatprep.subr.mxu1 %v2014_v49 }
  0x82   : > { %2471 = vmatprep.mubr.f32.mxu0 %v2991_v6  ;;  %2527 = vmatpush3.msra.mxu0 %v1982_v46 }
  0x83   : > { %2571 = vmatpush3.msra.mxu1 %v2014_v49  ;;  %2472 = vmatmul.mubr.f32.gmra.mxu0 %v3015_v17 }
  0x84   : > { %2528 = vmatprep.subr.mxu0 %v1981_v35  ;;  %2572 = vmatprep.subr.mxu1 %v2013_v48 }
  0x85   : > { %2515 = vmatprep.mubr.msk.f32.mxu1 %vm482_vm2, %v3130_v54  ;;  %2529 = vmatpush3.msra.mxu0 %v1981_v35 }
  0x86   : > { %2573 = vmatpush3.msra.mxu1 %v2013_v48  ;;  %2530 = vmatprep.subr.mxu0 %v1980_v50 }
  0x87   : > { %2516 = vmatmul.mubr.msk.f32.gmra.mxu1 %vm482_vm2, %v3151_v60  ;;  %2574 = vmatprep.subr.mxu1 %v2012_v51 }
  0x88   : > { %2474 = vmatprep.mubr.f32.mxu0 %v3022_v20  ;;  %2531 = vmatpush3.msra.mxu0 %v1980_v50 }
  0x89   : > { %2575 = vmatpush3.msra.mxu1 %v2012_v51  ;;  %2475 = vmatmul.mubr.f32.gmra.mxu0 %v3048_v30 }
  0x8a   : > { %2532 = vmatprep.subr.mxu0 %v1979_v52  ;;  %2576 = vmatprep.subr.mxu1 %v2011_v41 }
  0x8b   : > { %2518 = vmatprep.mubr.msk.f32.mxu1 %vm482_vm2, %v3157_v61  ;;  %2533 = vmatpush3.msra.mxu0 %v1979_v52 }
  0x8c   : > { %2577 = vmatpush3.msra.mxu1 %v2011_v41  ;;  %2534 = vmatprep.subr.mxu0 %v1978_v55 }
  0x8d   : > { %2519 = vmatmul.mubr.msk.f32.gmra.mxu1 %vm482_vm2, %v3180_v25  ;;  %2578 = vmatprep.subr.mxu1 %v2010_v56 }
  0x8e   : > { %2477 = vmatprep.mubr.f32.mxu0 %v3054_v31  ;;  %2535 = vmatpush3.msra.mxu0 %v1978_v55 }
  0x8f   : > { %2579 = vmatpush3.msra.mxu1 %v2010_v56  ;;  %2478 = vmatmul.mubr.f32.gmra.mxu0 %v3188_v4 }
  0x90   : > { %2536 = vmatprep.subr.mxu0 %v1977_v57  ;;  %2580 = vmatprep.subr.mxu1 %v2009_v58 }
  0x91   : > { %2521 = vmatprep.mubr.msk.f32.mxu1 %vm482_vm2, %v3186_v3  ;;  %2537 = vmatpush3.msra.mxu0 %v1977_v57 }
  0x92   : > { %2581 = vmatpush3.msra.mxu1 %v2009_v58  ;;  %2538 = vmatprep.subr.mxu0 %v1976_v19 }
  0x93   : > { %2522 = vmatmul.mubr.msk.f32.gmra.mxu1 %vm482_vm2, %v470_v59  ;;  %2582 = vmatprep.subr.mxu1 %v2008_v62 }
  0x94   : > { %2539 = vmatpush3.msra.mxu0 %v1976_v19  ;;  %2583 = vmatpush3.msra.mxu1 %v2008_v62 }
  0x95   : > { %2540 = vmatprep.subr.mxu0 %v1975_v63  ;;  %2584 = vmatprep.subr.mxu1 %v2007_v0 }
  0x96   : > { %2541 = vmatpush3.msra.mxu0 %v1975_v63  ;;  %2585 = vmatpush3.msra.mxu1 %v2007_v0 }
  0x97   : > { %2542 = vmatprep.subr.mxu0 %v1974_v2  ;;  %2586 = vmatprep.subr.mxu1 %v2006_v5 }
  0x98   : > { %2543 = vmatpush3.msra.mxu0 %v1974_v2  ;;  %2587 = vmatpush3.msra.mxu1 %v2006_v5 }
  0x99   : > { %2544 = vmatprep.subr.mxu0 %v1973_v7  ;;  %2588 = vmatprep.subr.mxu1 %v2005_v9 }
  0x9a   : > { %2545 = vmatpush3.msra.mxu0 %v1973_v7  ;;  %2589 = vmatpush3.msra.mxu1 %v2005_v9 }
  0x9b   : > { %2546 = vmatprep.subr.mxu0 %v1972_v10  ;;  %2590 = vmatprep.subr.mxu1 %v2004_v12 }
  0x9c   : > { %2547 = vmatpush3.msra.mxu0 %v1972_v10  ;;  %2591 = vmatpush3.msra.mxu1 %v2004_v12 }
  0x9d   : > { %2548 = vmatprep.subr.mxu0 %v1971_v13  ;;  %2592 = vmatprep.subr.mxu1 %v2003_v14 }
  0x9e   : > { %2549 = vmatpush3.msra.mxu0 %v1971_v13  ;;  %2593 = vmatpush3.msra.mxu1 %v2003_v14 }
  0x9f   : > { %2550 = vmatprep.subr.mxu0 %v1970_v15  ;;  %2594 = vmatprep.subr.mxu1 %v2002_v18 }
  0xa0   : > { %2551 = vmatpush3.msra.mxu0 %v1970_v15  ;;  %2595 = vmatpush3.msra.mxu1 %v2002_v18 }
  0xa1   : > { %2552 = vmatprep.subr.mxu0 %v1969_v21  ;;  %2596 = vmatprep.subr.mxu1 %v2001_v22 }
  0xa2   : > { %2553 = vmatpush3.msra.mxu0 %v1969_v21  ;;  %2597 = vmatpush3.msra.mxu1 %v2001_v22 }
  0xa3   : > { %2554 = vmatprep.subr.mxu0 %v1968_v23  ;;  %2598 = vmatprep.subr.mxu1 %v2000_v26 }
  0xa4   : > { %2555 = vmatpush3.msra.mxu0 %v1968_v23  ;;  %2556 = vmatprep.mubr.msk.f32.mxu0 %vm2916_vm1, %v3002_v11  ;;  %v2029_v11 = vld [vmem:[%s3541_s3 + $0x468] sm:$0xff] }
  0xa5   : > { %2599 = vmatpush3.msra.mxu1 %v2000_v26  ;;  %2557 = vmatmul.mubr.msk.f32.vlgmr.msra.gmra.mxu0 %vm2916_vm1, %v3013_v16  ;;  %v2026_v16 = vld [vmem:[%s3541_s3 + $0x450] sm:$0xff] }
  0xa6   : > { %2600 = vmatprep.mubr.f32.mxu1 %v2981_v1  ;;  %2612 = vmatprep.subr.mxu0 %v2031_v27  ;;  %v2028_v1 = vld [vmem:[%s3541_s3 + $0x460] sm:$0xff] }
  0xa7   : > { %2656 = vmatprep.subr.mxu1 %v2031_v27  ;;  %2601 = vmatmul.mubr.f32.vlgmr.msra.gmra.mxu1 %v2991_v6  ;;  %v2027_v6 = vld [vmem:[%s3541_s3 + $0x458] sm:$0xff] }
  0xa8   : > { %2613 = vmatpush3.msra.mxu0 %v2031_v27  ;;  %2672 = vmatpush3.msra.mxu1 %v2031_v27 }
  0xa9   : > { %2614 = vmatprep.subr.mxu0 %v2030_v28  ;;  %2657 = vmatprep.subr.mxu1 %v2030_v28 }
  0xaa   : > { %2559 = vmatprep.mubr.msk.f32.mxu0 %vm2916_vm1, %v3036_v24  ;;  %2615 = vmatpush3.msra.mxu0 %v2030_v28  ;;  %v2023_v24 = vld [vmem:[%s3541_s3 + $0x438] sm:$0xff] }
  0xab   : > { %2673 = vmatpush3.msra.mxu1 %v2030_v28  ;;  %2560 = vmatmul.mubr.msk.f32.gmra.mxu0 %vm2916_vm1, %v3046_v29  ;;  %v2019_v29 = vld [vmem:[%s3541_s3 + $0x418] sm:$0xff] }
  0xac   : > { %2616 = vmatprep.subr.mxu0 %v2029_v11  ;;  %2658 = vmatprep.subr.mxu1 %v2029_v11 }
  0xad   : > { %2603 = vmatprep.mubr.f32.mxu1 %v3015_v17  ;;  %2617 = vmatpush3.msra.mxu0 %v2029_v11  ;;  %v2025_v17 = vld [vmem:[%s3541_s3 + $0x448] sm:$0xff] }
  0xae   : > { %2674 = vmatpush3.msra.mxu1 %v2029_v11  ;;  %2618 = vmatprep.subr.mxu0 %v2028_v1 }
  0xaf   : > { %2604 = vmatmul.mubr.f32.gmra.mxu1 %v3022_v20  ;;  %2659 = vmatprep.subr.mxu1 %v2028_v1  ;;  %v2024_v20 = vld [vmem:[%s3541_s3 + $0x440] sm:$0xff] }
  0xb0   : > { %2562 = vmatprep.mubr.msk.f32.mxu0 %vm2916_vm1, %v3067_v34  ;;  %2619 = vmatpush3.msra.mxu0 %v2028_v1  ;;  %v2016_v34 = vld [vmem:[%s3541_s3 + $0x400] sm:$0xff] }
  0xb1   : > { %2675 = vmatpush3.msra.mxu1 %v2028_v1  ;;  %2563 = vmatmul.mubr.msk.f32.gmra.mxu0 %vm2916_vm1, %v3076_v42 }
  0xb2   : > { %2620 = vmatprep.subr.mxu0 %v2027_v6  ;;  %2660 = vmatprep.subr.mxu1 %v2027_v6 }
  0xb3   : > { %2606 = vmatprep.mubr.f32.mxu1 %v3048_v30  ;;  %2621 = vmatpush3.msra.mxu0 %v2027_v6  ;;  %v2018_v30 = vld [vmem:[%s3541_s3 + $0x410] sm:$0xff] }
  0xb4   : > { %2676 = vmatpush3.msra.mxu1 %v2027_v6  ;;  %2622 = vmatprep.subr.mxu0 %v2026_v16 }
  0xb5   : > { %2607 = vmatmul.mubr.f32.gmra.mxu1 %v3054_v31  ;;  %2661 = vmatprep.subr.mxu1 %v2026_v16  ;;  %v2017_v31 = vld [vmem:[%s3541_s3 + $0x408] sm:$0xff] }
  0xb6   : > { %2565 = vmatprep.mubr.msk.f32.mxu0 %vm2916_vm1, %v439_v8  ;;  %2623 = vmatpush3.msra.mxu0 %v2026_v16 }
  0xb7   : > { %2677 = vmatpush3.msra.mxu1 %v2026_v16  ;;  %2566 = vmatmul.mubr.msk.f32.gmra.mxu0 %vm2916_vm1, %v2913_v39  ;;  %v2022_v39 = vld [vmem:[%s3541_s3 + $0x430] sm:$0xff] }
  0xb8   : > { %2624 = vmatprep.subr.mxu0 %v2025_v17  ;;  %2662 = vmatprep.subr.mxu1 %v2025_v17 }
  0xb9   : > { %2609 = vmatprep.mubr.f32.mxu1 %v3188_v4  ;;  %2625 = vmatpush3.msra.mxu0 %v2025_v17 }
  0xba   : > { %2678 = vmatpush3.msra.mxu1 %v2025_v17  ;;  %2626 = vmatprep.subr.mxu0 %v2024_v20 }
  0xbb   : > { %2610 = vmatmul.mubr.f32.gmra.mxu1 %v2738_v38  ;;  %2663 = vmatprep.subr.mxu1 %v2024_v20  ;;  %v2020_v38 = vld [vmem:[%s3541_s3 + $0x420] sm:$0xff] }
  0xbc   : > { %2627 = vmatpush3.msra.mxu0 %v2024_v20  ;;  %2679 = vmatpush3.msra.mxu1 %v2024_v20 }
  0xbd   : > { %2628 = vmatprep.subr.mxu0 %v2023_v24  ;;  %2664 = vmatprep.subr.mxu1 %v2023_v24 }
  0xbe   : > { %2629 = vmatpush3.msra.mxu0 %v2023_v24  ;;  %2680 = vmatpush3.msra.mxu1 %v2023_v24 }
  0xbf   : > { %2630 = vmatprep.subr.mxu0 %v2022_v39  ;;  %2665 = vmatprep.subr.mxu1 %v2022_v39 }
  0xc0   : > { %2631 = vmatpush3.msra.mxu0 %v2022_v39  ;;  %2681 = vmatpush3.msra.mxu1 %v2022_v39 }
  0xc1   : > { %2632 = vmatprep.subr.mxu0 %v2021_v40  ;;  %2666 = vmatprep.subr.mxu1 %v2021_v40 }
  0xc2   : > { %2633 = vmatpush3.msra.mxu0 %v2021_v40  ;;  %2682 = vmatpush3.msra.mxu1 %v2021_v40 }
  0xc3   : > { %2634 = vmatprep.subr.mxu0 %v2020_v38  ;;  %2667 = vmatprep.subr.mxu1 %v2020_v38 }
  0xc4   : > { %2635 = vmatpush3.msra.mxu0 %v2020_v38  ;;  %2683 = vmatpush3.msra.mxu1 %v2020_v38 }
  0xc5   : > { %2636 = vmatprep.subr.mxu0 %v2019_v29  ;;  %2668 = vmatprep.subr.mxu1 %v2019_v29 }
  0xc6   : > { %2637 = vmatpush3.msra.mxu0 %v2019_v29  ;;  %2684 = vmatpush3.msra.mxu1 %v2019_v29 }
  0xc7   : > { %2638 = vmatprep.subr.mxu0 %v2018_v30  ;;  %2669 = vmatprep.subr.mxu1 %v2018_v30 }
  0xc8   : > { %2639 = vmatpush3.msra.mxu0 %v2018_v30  ;;  %2685 = vmatpush3.msra.mxu1 %v2018_v30 }
  0xc9   : > { %2640 = vmatprep.subr.mxu0 %v2017_v31  ;;  %2670 = vmatprep.subr.mxu1 %v2017_v31 }
  0xca   : > { %2641 = vmatpush3.msra.mxu0 %v2017_v31  ;;  %2686 = vmatpush3.msra.mxu1 %v2017_v31 }
  0xcb   : > { %2642 = vmatprep.subr.mxu0 %v2016_v34  ;;  %2671 = vmatprep.subr.mxu1 %v2016_v34 }
  0xcc   : > { %2643 = vmatpush3.msra.mxu0 %v2016_v34  ;;  %2687 = vmatpush3.msra.mxu1 %v2016_v34 }
  0xcd   : > { %2644 = vmatprep.mubr.msk.f32.mxu0 %vm482_vm2, %v3124_v53  ;;  %2650 = vmatprep.mubr.msk.f32.mxu1 %vm482_vm2, %v3180_v25 }
  0xce   : > { %2645 = vmatmul.mubr.msk.f32.vlgmr.msra.gmra.mxu0 %vm482_vm2, %v3130_v54  ;;  %2651 = vmatmul.mubr.msk.f32.vlgmr.msra.gmra.mxu1 %vm482_vm2, %v3186_v3 }
  0xcf   : > { %2647 = vmatprep.mubr.msk.f32.mxu0 %vm482_vm2, %v3151_v60  ;;  %2653 = vmatprep.mubr.msk.f32.mxu1 %vm482_vm2, %v470_v59 }
  0xd2   : > { %2648 = vmatmul.mubr.msk.f32.gmra.mxu0 %vm482_vm2, %v3157_v61  ;;  %2654 = vmatmul.mubr.msk.f32.gmra.mxu1 %vm482_vm2, %v3099_v47 }
  0xee   : > { %v2294_v42 = vpop.f32.mrf.mxu0  ;;  %v2338_v53 = vpop.f32.mrf.mxu1 }
  0xef   : > { %v703_v17 = vadd.f32 %v2338_v53, %v2294_v42 }
  0xf0   : > { %v592_v25 = vpop.f32.mrf.mxu0  ;;  %v697_v54 = vpop.f32.mrf.mxu1 }
  0xf1   : > { %v698_v24 = vadd.f32 %v697_v54, %v592_v25 }
 0x103   : > { %v2297_v8 = vpop.f32.mrf.mxu0  ;;  %v2341_v32 = vpop.f32.mrf.mxu1 }
 0x105   : > { %v602_v3 = vpop.f32.mrf.mxu0  ;;  %v707_v33 = vpop.f32.mrf.mxu1 }
 0x109   : > { %v2300_v36 = vpop.f32.mrf.mxu0  ;;  %v2344_v60 = vpop.f32.mrf.mxu1 }
 0x10a   : > { %v723_v20 = vadd.f32 %v2344_v60, %v2300_v36 }
 0x10b   : > { %v612_v37 = vpop.f32.mrf.mxu0  ;;  %v717_v4 = vpop.f32.mrf.mxu1 }
 0x10c   : > { %v718_v38 = vadd.f32 %v717_v4, %v612_v37 }
 0x10f   : > { %v2303_v43 = vpop.f32.mrf.mxu0  ;;  %v2347_v44 = vpop.f32.mrf.mxu1 }
 0x111   : > { %v622_v45 = vpop.f32.mrf.mxu0  ;;  %v727_v46 = vpop.f32.mrf.mxu1 }
 0x112   : > { %v728_v53 = vadd.f32 %v727_v46, %v622_v45 }
 0x115   : > { %v2382_v61 = vpop.f32.mrf.mxu0 }
 0x116   : > { %v859_v29 = vadd.f32 %v2382_v61, %v703_v17 }
 0x117   : > { %v2426_v49 = vpop.f32.mrf.mxu1  ;;  %v819_v35 = vpop.f32.mrf.mxu0 }
 0x118   : > { %v858_v31 = vadd.f32 %v819_v35, %v698_v24 }
 0x119   : > { %v949_v47 = vpop.f32.mrf.mxu1 }
 0x11a   : > { %v988_v60 = vadd.f32 %v949_v47, %v858_v31 }
 0x11b   : > { %v2385_v48 = vpop.f32.mrf.mxu0 }
 0x11d   : > { %v829_v51 = vpop.f32.mrf.mxu0 }
 0x11f   : > { %v3486_v50 = vpop.f32.mrf.mxu1 }
 0x120   : > { %3547 = vst [vmem:[#allocation2_spill] sm:$0xff] %v3486_v50  ;;  %v708_v50 = vadd.f32 %v707_v33, %v602_v3 }
 0x121   : > { %v3488_v52 = vpop.f32.mrf.mxu1  ;;  %v2388_v41 = vpop.f32.mrf.mxu0 }
 0x122   : > { %3548 = vst [vmem:[#allocation3_spill] sm:$0xff] %v3488_v52  ;;  %v863_v30 = vadd.f32 %v2388_v41, %v723_v20  ;;  %v860_v54 = vadd.f32 %v829_v51, %v708_v50 }
 0x123   : > { %v839_v56 = vpop.f32.mrf.mxu0 }
 0x124   : > { %v862_v34 = vadd.f32 %v839_v56, %v718_v38 }
 0x125   : > { %v2432_v55 = vpop.f32.mrf.mxu1 }
 0x126   : > { %v993_v42 = vadd.f32 %v2432_v55, %v863_v30 }
 0x127   : > { %v969_v57 = vpop.f32.mrf.mxu1  ;;  %v2391_v58 = vpop.f32.mrf.mxu0 }
 0x129   : > { %v849_v19 = vpop.f32.mrf.mxu0 }
 0x12a   : > { %v864_v17 = vadd.f32 %v849_v19, %v728_v53 }
 0x12b   : > { %v2435_v59 = vpop.f32.mrf.mxu1 }
 0x12d   : > { %v979_v62 = vpop.f32.mrf.mxu1 }
 0x12e   : > { %v994_v45 = vadd.f32 %v979_v62, %v864_v17 }
 0x13d   : > { %v2470_v63 = vpop.f32.mrf.mxu0 }
 0x13f   : > { %v2514_v0 = vpop.f32.mrf.mxu1  ;;  %v1079_v2 = vpop.f32.mrf.mxu0 }
 0x140   : > { %v1118_v61 = vadd.f32 %v1079_v2, %v988_v60 }
 0x141   : > { %v1209_v5 = vpop.f32.mrf.mxu1 }
 0x142   : > { %v1248_v47 = vadd.f32 %v1209_v5, %v1118_v61 }
 0x143   : > { %v2473_v7 = vpop.f32.mrf.mxu0 }
 0x145   : > { %v1089_v10 = vpop.f32.mrf.mxu0 }
 0x147   : > { %v3490_v9 = vpop.f32.mrf.mxu1 }
 0x148   : > { %3549 = vst [vmem:[#allocation4_spill] sm:$0xff] %v3490_v9 }
 0x149   : > { %v3492_v12 = vpop.f32.mrf.mxu1  ;;  %v2476_v13 = vpop.f32.mrf.mxu0 }
 0x14a   : > { %3550 = vst [vmem:[#allocation5_spill] sm:$0xff] %v3492_v12  ;;  %v713_v12 = vadd.f32 %v2341_v32, %v2297_v8  ;;  %v1123_v37 = vadd.f32 %v2476_v13, %v993_v42  ;;  %v3554_v8 = vld [vmem:[#allocation2_spill] sm:$0xff] }
 0x14b   : > { %v1099_v15 = vpop.f32.mrf.mxu0 }
 0x14c   : > { %v861_v36 = vadd.f32 %v2385_v48, %v713_v12 }
 0x14d   : > { %v2520_v14 = vpop.f32.mrf.mxu1 }
 0x14e   : > { %v991_v32 = vadd.f32 %v3554_v8, %v861_v36 }
 0x14f   : > { %v1229_v18 = vpop.f32.mrf.mxu1  ;;  %v2479_v21 = vpop.f32.mrf.mxu0  ;;  %v3556_v13 = vld [vmem:[#allocation4_spill] sm:$0xff] }
 0x150   : > { %v1121_v46 = vadd.f32 %v2473_v7, %v991_v32 }
 0x151   : > { %v1109_v23 = vpop.f32.mrf.mxu0 }
 0x153   : > { %v2523_v22 = vpop.f32.mrf.mxu1 }
 0x155   : > { %v3494_v26 = vpop.f32.mrf.mxu1 }
 0x156   : > { %3551 = vst [vmem:[#allocation6_spill] sm:$0xff] %v3494_v26  ;;  %v733_v26 = vadd.f32 %v2347_v44, %v2303_v43  ;;  %v3555_v44 = vld [vmem:[#allocation3_spill] sm:$0xff] }
 0x157   : > { %v990_v3 = vadd.f32 %v3555_v44, %v860_v54 }
 0x158   : > { %v865_v25 = vadd.f32 %v2391_v58, %v733_v26 }
 0x159   : > { %v1120_v55 = vadd.f32 %v1089_v10, %v990_v3 }
 0x15a   : > { %v995_v43 = vadd.f32 %v2435_v59, %v865_v25  ;;  %v1251_v59 = vadd.f32 %v3556_v13, %v1121_v46 }
 0x15c   : > { %v1125_v48 = vadd.f32 %v2479_v21, %v995_v43 }
 0x15d   : > { %v3558_v21 = vld [vmem:[#allocation6_spill] sm:$0xff] }
 0x165   : > { %v2558_v27 = vpop.f32.mrf.mxu0 }
 0x167   : > { %v2602_v28 = vpop.f32.mrf.mxu1  ;;  %v1339_v11 = vpop.f32.mrf.mxu0 }
 0x168   : > { %v1378_v2 = vadd.f32 %v1339_v11, %v1248_v47 }
 0x169   : > { %v1469_v1 = vpop.f32.mrf.mxu1 }
 0x16a   : > { %v1508_v10 = vadd.f32 %v1469_v1, %v1378_v2 }
 0x16b   : > { %v2561_v6 = vpop.f32.mrf.mxu0 }
 0x16c   : > { %v1381_v20 = vadd.f32 %v2561_v6, %v1251_v59 }
 0x16d   : > { %v1349_v39 = vpop.f32.mrf.mxu0 }
 0x16f   : > { %v3496_v16 = vpop.f32.mrf.mxu1 }
 0x170   : > { %3552 = vst [vmem:[#allocation7_spill] sm:$0xff] %v3496_v16  ;;  %v989_v16 = vadd.f32 %v2426_v49, %v859_v29  ;;  %v1253_v49 = vadd.f32 %v2520_v14, %v1123_v37  ;;  %v3557_v14 = vld [vmem:[#allocation5_spill] sm:$0xff] }
 0x171   : > { %v3498_v40 = vpop.f32.mrf.mxu1  ;;  %v2564_v9 = vpop.f32.mrf.mxu0  ;;  %v1250_v62 = vadd.f32 %v3557_v14, %v1120_v55 }
 0x172   : > { %3553 = vst [vmem:[#allocation8_spill] sm:$0xff] %v3498_v40  ;;  %v992_v40 = vadd.f32 %v969_v57, %v862_v34  ;;  %v1119_v4 = vadd.f32 %v2470_v63, %v989_v16  ;;  %v1383_v19 = vadd.f32 %v2564_v9, %v1253_v49  ;;  %v1124_v63 = vadd.f32 %v1109_v23, %v994_v45  ;;  %v2040_v9 = vld [vmem:[%s3542_s4] ss:$0 sm:$0xff] }
 0x173   : > { %v1359_v41 = vpop.f32.mrf.mxu0  ;;  %v1380_v11 = vadd.f32 %v1349_v39, %v1250_v62 }
 0x174   : > { %v1122_v56 = vadd.f32 %v1099_v15, %v992_v40  ;;  %v1249_v33 = vadd.f32 %v2514_v0, %v1119_v4  ;;  %v1255_v15 = vadd.f32 %v2523_v22, %v1125_v48  ;;  %v1254_v16 = vadd.f32 %v3558_v21, %v1124_v63 }
 0x175   : > { %v2608_v52 = vpop.f32.mrf.mxu1 }
 0x176   : > { %v1252_v57 = vadd.f32 %v1229_v18, %v1122_v56  ;;  %v1379_v58 = vadd.f32 %v2558_v27, %v1249_v33  ;;  %v1513_v5 = vadd.f32 %v2608_v52, %v1383_v19 }
 0x177   : > { %v1489_v35 = vpop.f32.mrf.mxu1  ;;  %v2567_v50 = vpop.f32.mrf.mxu0  ;;  %v3559_v31 = vld [vmem:[#allocation7_spill] sm:$0xff] }
 0x178   : > { %v1382_v12 = vadd.f32 %v1359_v41, %v1252_v57  ;;  %v1509_v7 = vadd.f32 %v2602_v28, %v1379_v58  ;;  %v1385_v18 = vadd.f32 %v2567_v50, %v1255_v15  ;;  %v1511_v39 = vadd.f32 %v3559_v31, %v1381_v20 }
 0x179   : > { %v1369_v26 = vpop.f32.mrf.mxu0  ;;  %v3560_v36 = vld [vmem:[#allocation8_spill] sm:$0xff] }
 0x17a   : > { %v1512_v22 = vadd.f32 %v1489_v35, %v1382_v12  ;;  %v1384_v38 = vadd.f32 %v1369_v26, %v1254_v16  ;;  %v1510_v60 = vadd.f32 %v3560_v36, %v1380_v11 }
 0x17b   : > { %v2611_v51 = vpop.f32.mrf.mxu1 }
 0x17c   : > { %v1515_v34 = vadd.f32 %v2611_v51, %v1385_v18 }
 0x17d   : > { %v1499_v0 = vpop.f32.mrf.mxu1 }
 0x17e   : > { %v1514_v4 = vadd.f32 %v1499_v0, %v1384_v38 }
 0x18e   : > { %v2646_v27 = vpop.f32.mrf.mxu0  ;;  %v2652_v23 = vpop.f32.mrf.mxu1 }
 0x18f   : > { %v1639_v24 = vadd.f32 %v2646_v27, %v1509_v7  ;;  %v1643_v40 = vadd.f32 %v2652_v23, %v1513_v5 }
 0x190   : > { %v1599_v52 = vpop.f32.mrf.mxu0  ;;  %v1619_v28 = vpop.f32.mrf.mxu1 }
 0x191   : > { %v1654_v1 = vadd.f32 %v2040_v9, %v1639_v24  ;;  %v1658_v6 = vadd.f32 %v2040_v9, %v1643_v40  ;;  %v1638_v29 = vadd.f32 %v1599_v52, %v1508_v10  ;;  %v1642_v30 = vadd.f32 %v1619_v28, %v1512_v22 }
 0x192   : > { %v2649_v42 = vpop.f32.mrf.mxu0  ;;  %v2655_v53 = vpop.f32.mrf.mxu1 }
 0x193   : > { %1662 = vst [vmem:[%s3512_s7 + $0x8] sm:$0xff] %v1654_v1  ;;  %1666 = vst [vmem:[%s3512_s7 + $0x28] sm:$0xff] %v1658_v6  ;;  %v1653_v25 = vadd.f32 %v2040_v9, %v1638_v29  ;;  %v1657_v54 = vadd.f32 %v2040_v9, %v1642_v30  ;;  %v1641_v37 = vadd.f32 %v2649_v42, %v1511_v39 }
 0x194   : > { %v1645_v17 = vadd.f32 %v2655_v53, %v1515_v34  ;;  %v1609_v61 = vpop.f32.mrf.mxu0  ;;  %v1629_v41 = vpop.f32.mrf.mxu1  ;;  %v1683_v44 = vmul.f32 %v1654_v1, %v1654_v1  ;;  %v1687_v19 = vmul.f32 %v1658_v6, %v1658_v6 }
 0x195   : > { %1661 = vst [vmem:[%s3512_s7] sm:$0xff] %v1653_v25  ;;  %v1682_v35 = vmul.f32 %v1653_v25, %v1653_v25  ;;  %1665 = vst [vmem:[%s3512_s7 + $0x20] sm:$0xff] %v1657_v54  ;;  %v1640_v56 = vadd.f32 %v1609_v61, %v1510_v60  ;;  %v1656_v8 = vadd.f32 %v2040_v9, %v1641_v37 }
 0x196   : > { %v1660_v32 = vadd.f32 %v2040_v9, %v1645_v17  ;;  %v1644_v43 = vadd.f32 %v1629_v41, %v1514_v4  ;;  %v1669_v3 = vadd.f32 %v1654_v1, %v1653_v25  ;;  %v1686_v55 = vmul.f32 %v1657_v54, %v1657_v54 }
 0x197   : > { %v1655_v33 = vadd.f32 %v2040_v9, %v1640_v56  ;;  %1664 = vst [vmem:[%s3512_s7 + $0x18] sm:$0xff] %v1656_v8  ;;  %v1690_v45 = vadd.f32 %v1683_v44, %v1682_v35  ;;  %v1685_v48 = vmul.f32 %v1656_v8, %v1656_v8 }
 0x198   : > { %1668 = vst [vmem:[%s3512_s7 + $0x38] sm:$0xff] %v1660_v32  ;;  %v1659_v49 = vadd.f32 %v2040_v9, %v1644_v43  ;;  %v1689_v15 = vmul.f32 %v1660_v32, %v1660_v32 }
 0x199   : > { %1663 = vst [vmem:[%s3512_s7 + $0x10] sm:$0xff] %v1655_v33  ;;  %v1670_v46 = vadd.f32 %v1669_v3, %v1655_v33  ;;  %v1684_v47 = vmul.f32 %v1655_v33, %v1655_v33 }
 0x19a   : > { %1667 = vst [vmem:[%s3512_s7 + $0x30] sm:$0xff] %v1659_v49  ;;  %v1688_v13 = vmul.f32 %v1659_v49, %v1659_v49 }
 0x19b   : > { %v1671_v50 = vadd.f32 %v1670_v46, %v1656_v8  ;;  %v1691_v51 = vadd.f32 %v1690_v45, %v1684_v47 }
 0x19d   : > { %v1692_v57 = vadd.f32 %v1691_v51, %v1685_v48  ;;  %v1672_v58 = vadd.f32 %v1671_v50, %v1657_v54 }
 0x19f   : > { %v1673_v63 = vadd.f32 %v1672_v58, %v1658_v6  ;;  %v1693_v2 = vadd.f32 %v1692_v57, %v1686_v55 }
 0x1a1   : > { %v1674_v12 = vadd.f32 %v1673_v63, %v1659_v49  ;;  %v1694_v59 = vadd.f32 %v1693_v2, %v1687_v19 }
 0x1a3   : > { %v1675_v26 = vadd.f32 %v1674_v12, %v1660_v32  ;;  %v1695_v0 = vadd.f32 %v1694_v59, %v1688_v13 }
 0x1a5   : > { %v1676_v14 = vrot.slane %v1675_v26, 4  ;;  %v1696_v62 = vadd.f32 %v1695_v0, %v1689_v15 }
 0x1a7   : > { %v1677_v7 = vadd.f32 %v1676_v14, %v1675_v26  ;;  %v1697_v5 = vrot.slane %v1696_v62, 4 }
 0x1a9   : > { %v1678_v21 = vrot.slane %v1677_v7, 2  ;;  %v1698_v16 = vadd.f32 %v1697_v5, %v1696_v62 }
 0x1ab   : > { %v1679_v20 = vadd.f32 %v1678_v21, %v1677_v7  ;;  %v1699_v10 = vrot.slane %v1698_v16, 2 }
 0x1ad   : > { %v1680_v18 = vrot.slane %v1679_v20, 1  ;;  %v1700_v27 = vadd.f32 %v1699_v10, %v1698_v16 }
 0x1af   : > { %v1701_v9 = vrot.slane %v1700_v27, 1  ;;  %v1681_v23 = vadd.f32 %v1680_v18, %v1679_v20 }
 0x1b1   : > { %v1702_v11 = vadd.f32 %v1701_v9, %v1700_v27 }
 0x1b3   : > { %v1703_v22 = vsel %vm451_vm0, %v1681_v23, %v1702_v11 }
 0x1b4   : > { %1704 = vst [vmem:[%s293_s11] sm:$0x3] %v1703_v22 }
 0x1b5 PF: > { %s17_s23 = sadd.s32 1, %s2736_s23   ;;  %s3561_s21 = smov %s2732_s22 }
 0x1b6   : > { %p14_p5 = scmp.ge.s32.totalorder %s17_s23, 4   ;;  %s3562_s22 = smov %s3564_s24 }
 0x1b8   :  { %16 = sbr.rel (!%p14_p5) target bundleno = 2 (0x2), region = 91 }

</bundles_post_ra>
